<compile_context>
chip_gen: v5e
topology: v5e:2x2
jax: 0.10.0
libtpu: 0.0.40
codegen_flags: <defaults>
</compile_context>

<pallas_src>
import functools

import jax
import jax.numpy as jnp
from jax import lax
from jax.experimental import pallas as pl
from jax.experimental.pallas import tpu as pltpu

K = 10      # conv kernel size
PAD = 1     # conv padding
C1 = 32     # conv1 out channels
C2 = 64     # conv2 out channels
H1 = 128    # fc1 hidden
H2 = 64     # fc2 hidden
EPS = 1e-5  # BatchNorm eps
OUT_LANES = 128   # lane-dense output block width


def convnn_kernel(x_ref, w1_ref, s1_ref, t1_ref, w2_ref, s2_ref, t2_ref,
                  wf1_ref, bf1_ref, wf2_ref, bf2_ref, wf3t_ref, bf3_ref,
                  out_ref, *, l1, l2):
    """Forward pass for ONE batch sample (grid axis 0 = batch).

    x_ref:    (1, Cin, L+2P)  zero-padded input sample
    w1_ref:   (K, C1, Cin)    conv1 weights, per-tap layout
    s1/t1:    (C1, 1)         folded BN1 scale / shift (incl. conv1 bias)
    w2_ref:   (K, C2, C1)     conv2 weights, per-tap layout
    s2/t2:    (C2, 1)         folded BN2 scale / shift (incl. conv2 bias)
    wf1/bf1:  (H1, C2) / (H1, 1)
    wf2/bf2:  (H2, H1) / (H2, 1)
    wf3t/bf3: (H2, 1)  / (1, 1)   fc3 weight transposed for the VPU reduction
    out_ref:  (1, 1, 128)     fc3 scalar broadcast across a lane-dense block
    """
    x = x_ref[0]                                               # (Cin, L+2P)

    # ---- conv1 + bn1 + relu : K-tap accumulation, no im2col temporary ----
    y1 = jnp.dot(w1_ref[0], x[:, 0:l1], preferred_element_type=jnp.float32)
    for k in range(1, K):
        y1 = y1 + jnp.dot(w1_ref[k], x[:, k:k + l1],
                          preferred_element_type=jnp.float32)  # (C1, L1)
    y1 = jnp.maximum(y1 * s1_ref[...] + t1_ref[...], 0.0)

    # zero-pad conv1 activations for conv2 (padding=PAD each side), in registers
    zpad = jnp.zeros((C1, PAD), jnp.float32)
    y1p = jnp.concatenate([zpad, y1, zpad], axis=1)            # (C1, L1+2P)

    # ---- conv2 + bn2 + relu : K-tap accumulation ----
    y2 = jnp.dot(w2_ref[0], y1p[:, 0:l2], preferred_element_type=jnp.float32)
    for k in range(1, K):
        y2 = y2 + jnp.dot(w2_ref[k], y1p[:, k:k + l2],
                          preferred_element_type=jnp.float32)  # (C2, L2)
    y2 = jnp.maximum(y2 * s2_ref[...] + t2_ref[...], 0.0)

    # ---- AdaptiveAvgPool1d(1): per-channel mean over length (lane reduction) ----
    pooled = jnp.sum(y2, axis=1, keepdims=True) * (1.0 / l2)   # (C2, 1)

    # ---- MLP head (Dropout = identity in eval mode) ----
    h = jnp.maximum(
        jnp.dot(wf1_ref[...], pooled, preferred_element_type=jnp.float32)
        + bf1_ref[...], 0.0)                                   # (H1, 1)
    h = jnp.maximum(
        jnp.dot(wf2_ref[...], h, preferred_element_type=jnp.float32)
        + bf2_ref[...], 0.0)                                   # (H2, 1)
    # fc3: 1-row output -> VPU multiply + sublane reduction (skip the MXU)
    v = jnp.sum(wf3t_ref[...] * h, axis=0, keepdims=True) + bf3_ref[...]  # (1,1)
    out_ref[...] = jnp.broadcast_to(v.reshape(1, 1, 1), out_ref.shape)


def _replicated_spec(arr):
    """Full-array block, same for every grid step (weights / scalars)."""
    nd = arr.ndim
    return pl.BlockSpec(arr.shape, lambda i, _nd=nd: (0,) * _nd)


@jax.jit
def convnn_forward(x, params):
    """x: (N, Cin, L) float32 -> (N, 1) float32, matching ConvNN.forward (eval)."""
    N, Cin, L = x.shape
    L1 = L + 2 * PAD - K + 1
    L2 = L1 + 2 * PAD - K + 1

    # ---- wrapper-side glue: tiny zero-pad, BN folding, weight re-layouts ----
    x_pad = jnp.pad(x, ((0, 0), (0, 0), (PAD, PAD)))           # (N, Cin, L+2P)

    # conv weights in per-tap layout: (C_out, C_in, K) -> (K, C_out, C_in)
    w1_r = jnp.transpose(params["conv1_w"], (2, 0, 1))
    w2_r = jnp.transpose(params["conv2_w"], (2, 0, 1))

    # fold eval-mode BatchNorm + conv bias into per-channel scale/shift
    s1 = params["bn1_g"] / jnp.sqrt(params["bn1_rv"] + EPS)
    t1 = (params["conv1_b"] - params["bn1_rm"]) * s1 + params["bn1_b"]
    s2 = params["bn2_g"] / jnp.sqrt(params["bn2_rv"] + EPS)
    t2 = (params["conv2_b"] - params["bn2_rm"]) * s2 + params["bn2_b"]

    args = (
        x_pad,
        w1_r, s1.reshape(C1, 1), t1.reshape(C1, 1),
        w2_r, s2.reshape(C2, 1), t2.reshape(C2, 1),
        params["fc1_w"], params["fc1_b"].reshape(H1, 1),
        params["fc2_w"], params["fc2_b"].reshape(H2, 1),
        params["fc3_w"].T.reshape(H2, 1), params["fc3_b"].reshape(1, 1),
    )

    in_specs = ([pl.BlockSpec((1, Cin, L + 2 * PAD), lambda i: (i, 0, 0))]
                + [_replicated_spec(a) for a in args[1:]])

    kernel = functools.partial(convnn_kernel, l1=L1, l2=L2)

    out = pl.pallas_call(
        kernel,
        out_shape=jax.ShapeDtypeStruct((N, 1, OUT_LANES), jnp.float32),
        grid=(N,),
        in_specs=in_specs,
        out_specs=pl.BlockSpec((1, 1, OUT_LANES), lambda i: (i, 0, 0)),
        compiler_params=pltpu.CompilerParams(
            dimension_semantics=("parallel",),
            vmem_limit_bytes=32 * 1024 * 1024),
    )(*args)

    return out[:, 0, :1]                                       # (N, 1)


def ref_forward(x, params):
    """Pure-JAX reference of ConvNN.forward in eval mode."""
    def conv1d(h, w, b):
        y = lax.conv_general_dilated(
            h, w, window_strides=(1,), padding=[(PAD, PAD)],
            dimension_numbers=("NCH", "OIH", "NCH"))
        return y + b[None, :, None]

    def bn(h, g, be, rm, rv):
        return (h - rm[None, :, None]) / jnp.sqrt(rv[None, :, None] + EPS) \
            * g[None, :, None] + be[None, :, None]

    h = jax.nn.relu(bn(conv1d(x, params["conv1_w"], params["conv1_b"]),
                       params["bn1_g"], params["bn1_b"],
                       params["bn1_rm"], params["bn1_rv"]))
    h = jax.nn.relu(bn(conv1d(h, params["conv2_w"], params["conv2_b"]),
                       params["bn2_g"], params["bn2_b"],
                       params["bn2_rm"], params["bn2_rv"]))
    h = jnp.mean(h, axis=2)                      # AdaptiveAvgPool1d(1) + flatten
    h = jax.nn.relu(h @ params["fc1_w"].T + params["fc1_b"])   # dropout=id (eval)
    h = jax.nn.relu(h @ params["fc2_w"].T + params["fc2_b"])   # dropout=id (eval)
    return h @ params["fc3_w"].T + params["fc3_b"]


if __name__ == "__main__":
    num_features, N, L = 4, 4, 32     # L >= 17 so both convs have valid output

    key = jax.random.PRNGKey(0)
    ks = jax.random.split(key, 20)

    params = {
        "conv1_w": 0.1 * jax.random.normal(ks[0], (C1, num_features, K), jnp.float32),
        "conv1_b": 0.1 * jax.random.normal(ks[1], (C1,), jnp.float32),
        "bn1_g": 1.0 + 0.1 * jax.random.normal(ks[2], (C1,), jnp.float32),
        "bn1_b": 0.1 * jax.random.normal(ks[3], (C1,), jnp.float32),
        "bn1_rm": 0.1 * jax.random.normal(ks[4], (C1,), jnp.float32),
        "bn1_rv": 1.0 + 0.1 * jax.random.uniform(ks[5], (C1,), jnp.float32),
        "conv2_w": 0.1 * jax.random.normal(ks[6], (C2, C1, K), jnp.float32),
        "conv2_b": 0.1 * jax.random.normal(ks[7], (C2,), jnp.float32),
        "bn2_g": 1.0 + 0.1 * jax.random.normal(ks[8], (C2,), jnp.float32),
        "bn2_b": 0.1 * jax.random.normal(ks[9], (C2,), jnp.float32),
        "bn2_rm": 0.1 * jax.random.normal(ks[10], (C2,), jnp.float32),
        "bn2_rv": 1.0 + 0.1 * jax.random.uniform(ks[11], (C2,), jnp.float32),
        "fc1_w": 0.1 * jax.random.normal(ks[12], (H1, C2), jnp.float32),
        "fc1_b": 0.1 * jax.random.normal(ks[13], (H1,), jnp.float32),
        "fc2_w": 0.1 * jax.random.normal(ks[14], (H2, H1), jnp.float32),
        "fc2_b": 0.1 * jax.random.normal(ks[15], (H2,), jnp.float32),
        "fc3_w": 0.1 * jax.random.normal(ks[16], (1, H2), jnp.float32),
        "fc3_b": 0.1 * jax.random.normal(ks[17], (1,), jnp.float32),
    }
    x = jax.random.normal(ks[18], (N, num_features, L), jnp.float32)

    out = jax.block_until_ready(convnn_forward(x, params))
    ref = jax.block_until_ready(ref_forward(x, params))

    assert out.shape == (N, 1), out.shape
    if not bool(jnp.allclose(out, ref, atol=1e-4, rtol=1e-4)):
        raise AssertionError(f"mismatch: pallas={out} ref={ref}")
    print("KERNEL_OK")
</pallas_src>

<mosaic_0001>
module attributes {stable_mosaic.version = 11 : i64} {
  func.func @convnn_kernel(%arg0: i32, %arg1: memref<1x4x34xf32, #tpu.memory_space<vmem>>, %arg2: memref<10x32x4xf32, #tpu.memory_space<vmem>>, %arg3: memref<32x1xf32, #tpu.memory_space<vmem>>, %arg4: memref<32x1xf32, #tpu.memory_space<vmem>>, %arg5: memref<10x64x32xf32, #tpu.memory_space<vmem>>, %arg6: memref<64x1xf32, #tpu.memory_space<vmem>>, %arg7: memref<64x1xf32, #tpu.memory_space<vmem>>, %arg8: memref<128x64xf32, #tpu.memory_space<vmem>>, %arg9: memref<128x1xf32, #tpu.memory_space<vmem>>, %arg10: memref<64x128xf32, #tpu.memory_space<vmem>>, %arg11: memref<64x1xf32, #tpu.memory_space<vmem>>, %arg12: memref<64x1xf32, #tpu.memory_space<vmem>>, %arg13: memref<1x1xf32, #tpu.memory_space<vmem>>, %arg14: memref<1x1x128xf32, #tpu.memory_space<vmem>>) attributes {dimension_semantics = [#tpu.dimension_semantics<parallel>], iteration_bounds = array<i64: 4>, scalar_prefetch = 0 : i64, scratch_operands = 0 : i64, tpu.core_type = #tpu.core_type<tc>, window_params = [{transform_indices = @transform_0, window_bounds = array<i64: 1, 4, 34>}, {pipeline_mode = #tpu.pipeline_mode<synchronous>, transform_indices = @transform_1, window_bounds = array<i64: 10, 32, 4>}, {pipeline_mode = #tpu.pipeline_mode<synchronous>, transform_indices = @transform_2, window_bounds = array<i64: 32, 1>}, {pipeline_mode = #tpu.pipeline_mode<synchronous>, transform_indices = @transform_3, window_bounds = array<i64: 32, 1>}, {pipeline_mode = #tpu.pipeline_mode<synchronous>, transform_indices = @transform_4, window_bounds = array<i64: 10, 64, 32>}, {pipeline_mode = #tpu.pipeline_mode<synchronous>, transform_indices = @transform_5, window_bounds = array<i64: 64, 1>}, {pipeline_mode = #tpu.pipeline_mode<synchronous>, transform_indices = @transform_6, window_bounds = array<i64: 64, 1>}, {pipeline_mode = #tpu.pipeline_mode<synchronous>, transform_indices = @transform_7, window_bounds = array<i64: 128, 64>}, {pipeline_mode = #tpu.pipeline_mode<synchronous>, transform_indices = @transform_8, window_bounds = array<i64: 128, 1>}, {pipeline_mode = #tpu.pipeline_mode<synchronous>, transform_indices = @transform_9, window_bounds = array<i64: 64, 128>}, {pipeline_mode = #tpu.pipeline_mode<synchronous>, transform_indices = @transform_10, window_bounds = array<i64: 64, 1>}, {pipeline_mode = #tpu.pipeline_mode<synchronous>, transform_indices = @transform_11, window_bounds = array<i64: 64, 1>}, {pipeline_mode = #tpu.pipeline_mode<synchronous>, transform_indices = @transform_12, window_bounds = array<i64: 1, 1>}, {transform_indices = @transform_13, window_bounds = array<i64: 1, 1, 128>}]} {
    %c0 = arith.constant 0 : index
    %c0_0 = arith.constant 0 : index
    %c0_1 = arith.constant 0 : index
    %0 = vector.load %arg1[%c0, %c0_0, %c0_1] : memref<1x4x34xf32, #tpu.memory_space<vmem>>, vector<1x4x34xf32>
    %1 = vector.shape_cast %0 : vector<1x4x34xf32> to vector<4x34xf32>
    %c0_2 = arith.constant 0 : index
    %c0_3 = arith.constant 0 : index
    %c0_4 = arith.constant 0 : index
    %2 = vector.load %arg2[%c0_2, %c0_3, %c0_4] : memref<10x32x4xf32, #tpu.memory_space<vmem>>, vector<1x32x4xf32>
    %3 = vector.shape_cast %2 : vector<1x32x4xf32> to vector<32x4xf32>
    %4 = vector.extract_strided_slice %1 {offsets = [0, 0], sizes = [4, 25], strides = [1, 1]} : vector<4x34xf32> to vector<4x25xf32>
    %cst = arith.constant dense<0.000000e+00> : vector<32x25xf32>
    %5 = tpu.matmul %3, %4, %cst {dimension_numbers = #tpu.dot_dimension_numbers<[1], [0], [0], [1], [0, 0, 1, 1], [], []>} : vector<32x4xf32>, vector<4x25xf32>, vector<32x25xf32> -> vector<32x25xf32>
    %c1 = arith.constant 1 : index
    %c0_5 = arith.constant 0 : index
    %c0_6 = arith.constant 0 : index
    %6 = vector.load %arg2[%c1, %c0_5, %c0_6] : memref<10x32x4xf32, #tpu.memory_space<vmem>>, vector<1x32x4xf32>
    %7 = vector.shape_cast %6 : vector<1x32x4xf32> to vector<32x4xf32>
    %8 = vector.extract_strided_slice %1 {offsets = [0, 1], sizes = [4, 25], strides = [1, 1]} : vector<4x34xf32> to vector<4x25xf32>
    %cst_7 = arith.constant dense<0.000000e+00> : vector<32x25xf32>
    %9 = tpu.matmul %7, %8, %cst_7 {dimension_numbers = #tpu.dot_dimension_numbers<[1], [0], [0], [1], [0, 0, 1, 1], [], []>} : vector<32x4xf32>, vector<4x25xf32>, vector<32x25xf32> -> vector<32x25xf32>
    %10 = arith.addf %5, %9 : vector<32x25xf32>
    %c2 = arith.constant 2 : index
    %c0_8 = arith.constant 0 : index
    %c0_9 = arith.constant 0 : index
    %11 = vector.load %arg2[%c2, %c0_8, %c0_9] : memref<10x32x4xf32, #tpu.memory_space<vmem>>, vector<1x32x4xf32>
    %12 = vector.shape_cast %11 : vector<1x32x4xf32> to vector<32x4xf32>
    %13 = vector.extract_strided_slice %1 {offsets = [0, 2], sizes = [4, 25], strides = [1, 1]} : vector<4x34xf32> to vector<4x25xf32>
    %cst_10 = arith.constant dense<0.000000e+00> : vector<32x25xf32>
    %14 = tpu.matmul %12, %13, %cst_10 {dimension_numbers = #tpu.dot_dimension_numbers<[1], [0], [0], [1], [0, 0, 1, 1], [], []>} : vector<32x4xf32>, vector<4x25xf32>, vector<32x25xf32> -> vector<32x25xf32>
    %15 = arith.addf %10, %14 : vector<32x25xf32>
    %c3 = arith.constant 3 : index
    %c0_11 = arith.constant 0 : index
    %c0_12 = arith.constant 0 : index
    %16 = vector.load %arg2[%c3, %c0_11, %c0_12] : memref<10x32x4xf32, #tpu.memory_space<vmem>>, vector<1x32x4xf32>
    %17 = vector.shape_cast %16 : vector<1x32x4xf32> to vector<32x4xf32>
    %18 = vector.extract_strided_slice %1 {offsets = [0, 3], sizes = [4, 25], strides = [1, 1]} : vector<4x34xf32> to vector<4x25xf32>
    %cst_13 = arith.constant dense<0.000000e+00> : vector<32x25xf32>
    %19 = tpu.matmul %17, %18, %cst_13 {dimension_numbers = #tpu.dot_dimension_numbers<[1], [0], [0], [1], [0, 0, 1, 1], [], []>} : vector<32x4xf32>, vector<4x25xf32>, vector<32x25xf32> -> vector<32x25xf32>
    %20 = arith.addf %15, %19 : vector<32x25xf32>
    %c4 = arith.constant 4 : index
    %c0_14 = arith.constant 0 : index
    %c0_15 = arith.constant 0 : index
    %21 = vector.load %arg2[%c4, %c0_14, %c0_15] : memref<10x32x4xf32, #tpu.memory_space<vmem>>, vector<1x32x4xf32>
    %22 = vector.shape_cast %21 : vector<1x32x4xf32> to vector<32x4xf32>
    %23 = vector.extract_strided_slice %1 {offsets = [0, 4], sizes = [4, 25], strides = [1, 1]} : vector<4x34xf32> to vector<4x25xf32>
    %cst_16 = arith.constant dense<0.000000e+00> : vector<32x25xf32>
    %24 = tpu.matmul %22, %23, %cst_16 {dimension_numbers = #tpu.dot_dimension_numbers<[1], [0], [0], [1], [0, 0, 1, 1], [], []>} : vector<32x4xf32>, vector<4x25xf32>, vector<32x25xf32> -> vector<32x25xf32>
    %25 = arith.addf %20, %24 : vector<32x25xf32>
    %c5 = arith.constant 5 : index
    %c0_17 = arith.constant 0 : index
    %c0_18 = arith.constant 0 : index
    %26 = vector.load %arg2[%c5, %c0_17, %c0_18] : memref<10x32x4xf32, #tpu.memory_space<vmem>>, vector<1x32x4xf32>
    %27 = vector.shape_cast %26 : vector<1x32x4xf32> to vector<32x4xf32>
    %28 = vector.extract_strided_slice %1 {offsets = [0, 5], sizes = [4, 25], strides = [1, 1]} : vector<4x34xf32> to vector<4x25xf32>
    %cst_19 = arith.constant dense<0.000000e+00> : vector<32x25xf32>
    %29 = tpu.matmul %27, %28, %cst_19 {dimension_numbers = #tpu.dot_dimension_numbers<[1], [0], [0], [1], [0, 0, 1, 1], [], []>} : vector<32x4xf32>, vector<4x25xf32>, vector<32x25xf32> -> vector<32x25xf32>
    %30 = arith.addf %25, %29 : vector<32x25xf32>
    %c6 = arith.constant 6 : index
    %c0_20 = arith.constant 0 : index
    %c0_21 = arith.constant 0 : index
    %31 = vector.load %arg2[%c6, %c0_20, %c0_21] : memref<10x32x4xf32, #tpu.memory_space<vmem>>, vector<1x32x4xf32>
    %32 = vector.shape_cast %31 : vector<1x32x4xf32> to vector<32x4xf32>
    %33 = vector.extract_strided_slice %1 {offsets = [0, 6], sizes = [4, 25], strides = [1, 1]} : vector<4x34xf32> to vector<4x25xf32>
    %cst_22 = arith.constant dense<0.000000e+00> : vector<32x25xf32>
    %34 = tpu.matmul %32, %33, %cst_22 {dimension_numbers = #tpu.dot_dimension_numbers<[1], [0], [0], [1], [0, 0, 1, 1], [], []>} : vector<32x4xf32>, vector<4x25xf32>, vector<32x25xf32> -> vector<32x25xf32>
    %35 = arith.addf %30, %34 : vector<32x25xf32>
    %c7 = arith.constant 7 : index
    %c0_23 = arith.constant 0 : index
    %c0_24 = arith.constant 0 : index
    %36 = vector.load %arg2[%c7, %c0_23, %c0_24] : memref<10x32x4xf32, #tpu.memory_space<vmem>>, vector<1x32x4xf32>
    %37 = vector.shape_cast %36 : vector<1x32x4xf32> to vector<32x4xf32>
    %38 = vector.extract_strided_slice %1 {offsets = [0, 7], sizes = [4, 25], strides = [1, 1]} : vector<4x34xf32> to vector<4x25xf32>
    %cst_25 = arith.constant dense<0.000000e+00> : vector<32x25xf32>
    %39 = tpu.matmul %37, %38, %cst_25 {dimension_numbers = #tpu.dot_dimension_numbers<[1], [0], [0], [1], [0, 0, 1, 1], [], []>} : vector<32x4xf32>, vector<4x25xf32>, vector<32x25xf32> -> vector<32x25xf32>
    %40 = arith.addf %35, %39 : vector<32x25xf32>
    %c8 = arith.constant 8 : index
    %c0_26 = arith.constant 0 : index
    %c0_27 = arith.constant 0 : index
    %41 = vector.load %arg2[%c8, %c0_26, %c0_27] : memref<10x32x4xf32, #tpu.memory_space<vmem>>, vector<1x32x4xf32>
    %42 = vector.shape_cast %41 : vector<1x32x4xf32> to vector<32x4xf32>
    %43 = vector.extract_strided_slice %1 {offsets = [0, 8], sizes = [4, 25], strides = [1, 1]} : vector<4x34xf32> to vector<4x25xf32>
    %cst_28 = arith.constant dense<0.000000e+00> : vector<32x25xf32>
    %44 = tpu.matmul %42, %43, %cst_28 {dimension_numbers = #tpu.dot_dimension_numbers<[1], [0], [0], [1], [0, 0, 1, 1], [], []>} : vector<32x4xf32>, vector<4x25xf32>, vector<32x25xf32> -> vector<32x25xf32>
    %45 = arith.addf %40, %44 : vector<32x25xf32>
    %c9 = arith.constant 9 : index
    %c0_29 = arith.constant 0 : index
    %c0_30 = arith.constant 0 : index
    %46 = vector.load %arg2[%c9, %c0_29, %c0_30] : memref<10x32x4xf32, #tpu.memory_space<vmem>>, vector<1x32x4xf32>
    %47 = vector.shape_cast %46 : vector<1x32x4xf32> to vector<32x4xf32>
    %48 = vector.extract_strided_slice %1 {offsets = [0, 9], sizes = [4, 25], strides = [1, 1]} : vector<4x34xf32> to vector<4x25xf32>
    %cst_31 = arith.constant dense<0.000000e+00> : vector<32x25xf32>
    %49 = tpu.matmul %47, %48, %cst_31 {dimension_numbers = #tpu.dot_dimension_numbers<[1], [0], [0], [1], [0, 0, 1, 1], [], []>} : vector<32x4xf32>, vector<4x25xf32>, vector<32x25xf32> -> vector<32x25xf32>
    %50 = arith.addf %45, %49 : vector<32x25xf32>
    %c0_32 = arith.constant 0 : index
    %c0_33 = arith.constant 0 : index
    %51 = vector.load %arg3[%c0_32, %c0_33] : memref<32x1xf32, #tpu.memory_space<vmem>>, vector<32x1xf32>
    %52 = vector.broadcast %51 : vector<32x1xf32> to vector<32x25xf32>
    %53 = arith.mulf %50, %52 : vector<32x25xf32>
    %c0_34 = arith.constant 0 : index
    %c0_35 = arith.constant 0 : index
    %54 = vector.load %arg4[%c0_34, %c0_35] : memref<32x1xf32, #tpu.memory_space<vmem>>, vector<32x1xf32>
    %55 = vector.broadcast %54 : vector<32x1xf32> to vector<32x25xf32>
    %56 = arith.addf %53, %55 : vector<32x25xf32>
    %cst_36 = arith.constant 0.000000e+00 : f32
    %57 = vector.broadcast %cst_36 : f32 to vector<32x25xf32>
    %58 = arith.maximumf %56, %57 : vector<32x25xf32>
    %cst_37 = arith.constant 0.000000e+00 : f32
    %59 = vector.broadcast %cst_37 : f32 to vector<32x1xf32>
    %60 = tpu.concatenate %59, %58, %59 in 1 : vector<32x1xf32>, vector<32x25xf32>, vector<32x1xf32> -> vector<32x27xf32>
    %c0_38 = arith.constant 0 : index
    %c0_39 = arith.constant 0 : index
    %c0_40 = arith.constant 0 : index
    %61 = vector.load %arg5[%c0_38, %c0_39, %c0_40] : memref<10x64x32xf32, #tpu.memory_space<vmem>>, vector<1x64x32xf32>
    %62 = vector.shape_cast %61 : vector<1x64x32xf32> to vector<64x32xf32>
    %63 = vector.extract_strided_slice %60 {offsets = [0, 0], sizes = [32, 18], strides = [1, 1]} : vector<32x27xf32> to vector<32x18xf32>
    %cst_41 = arith.constant dense<0.000000e+00> : vector<64x18xf32>
    %64 = tpu.matmul %62, %63, %cst_41 {dimension_numbers = #tpu.dot_dimension_numbers<[1], [0], [0], [1], [0, 0, 1, 1], [], []>} : vector<64x32xf32>, vector<32x18xf32>, vector<64x18xf32> -> vector<64x18xf32>
    %c1_42 = arith.constant 1 : index
    %c0_43 = arith.constant 0 : index
    %c0_44 = arith.constant 0 : index
    %65 = vector.load %arg5[%c1_42, %c0_43, %c0_44] : memref<10x64x32xf32, #tpu.memory_space<vmem>>, vector<1x64x32xf32>
    %66 = vector.shape_cast %65 : vector<1x64x32xf32> to vector<64x32xf32>
    %67 = vector.extract_strided_slice %60 {offsets = [0, 1], sizes = [32, 18], strides = [1, 1]} : vector<32x27xf32> to vector<32x18xf32>
    %cst_45 = arith.constant dense<0.000000e+00> : vector<64x18xf32>
    %68 = tpu.matmul %66, %67, %cst_45 {dimension_numbers = #tpu.dot_dimension_numbers<[1], [0], [0], [1], [0, 0, 1, 1], [], []>} : vector<64x32xf32>, vector<32x18xf32>, vector<64x18xf32> -> vector<64x18xf32>
    %69 = arith.addf %64, %68 : vector<64x18xf32>
    %c2_46 = arith.constant 2 : index
    %c0_47 = arith.constant 0 : index
    %c0_48 = arith.constant 0 : index
    %70 = vector.load %arg5[%c2_46, %c0_47, %c0_48] : memref<10x64x32xf32, #tpu.memory_space<vmem>>, vector<1x64x32xf32>
    %71 = vector.shape_cast %70 : vector<1x64x32xf32> to vector<64x32xf32>
    %72 = vector.extract_strided_slice %60 {offsets = [0, 2], sizes = [32, 18], strides = [1, 1]} : vector<32x27xf32> to vector<32x18xf32>
    %cst_49 = arith.constant dense<0.000000e+00> : vector<64x18xf32>
    %73 = tpu.matmul %71, %72, %cst_49 {dimension_numbers = #tpu.dot_dimension_numbers<[1], [0], [0], [1], [0, 0, 1, 1], [], []>} : vector<64x32xf32>, vector<32x18xf32>, vector<64x18xf32> -> vector<64x18xf32>
    %74 = arith.addf %69, %73 : vector<64x18xf32>
    %c3_50 = arith.constant 3 : index
    %c0_51 = arith.constant 0 : index
    %c0_52 = arith.constant 0 : index
    %75 = vector.load %arg5[%c3_50, %c0_51, %c0_52] : memref<10x64x32xf32, #tpu.memory_space<vmem>>, vector<1x64x32xf32>
    %76 = vector.shape_cast %75 : vector<1x64x32xf32> to vector<64x32xf32>
    %77 = vector.extract_strided_slice %60 {offsets = [0, 3], sizes = [32, 18], strides = [1, 1]} : vector<32x27xf32> to vector<32x18xf32>
    %cst_53 = arith.constant dense<0.000000e+00> : vector<64x18xf32>
    %78 = tpu.matmul %76, %77, %cst_53 {dimension_numbers = #tpu.dot_dimension_numbers<[1], [0], [0], [1], [0, 0, 1, 1], [], []>} : vector<64x32xf32>, vector<32x18xf32>, vector<64x18xf32> -> vector<64x18xf32>
    %79 = arith.addf %74, %78 : vector<64x18xf32>
    %c4_54 = arith.constant 4 : index
    %c0_55 = arith.constant 0 : index
    %c0_56 = arith.constant 0 : index
    %80 = vector.load %arg5[%c4_54, %c0_55, %c0_56] : memref<10x64x32xf32, #tpu.memory_space<vmem>>, vector<1x64x32xf32>
    %81 = vector.shape_cast %80 : vector<1x64x32xf32> to vector<64x32xf32>
    %82 = vector.extract_strided_slice %60 {offsets = [0, 4], sizes = [32, 18], strides = [1, 1]} : vector<32x27xf32> to vector<32x18xf32>
    %cst_57 = arith.constant dense<0.000000e+00> : vector<64x18xf32>
    %83 = tpu.matmul %81, %82, %cst_57 {dimension_numbers = #tpu.dot_dimension_numbers<[1], [0], [0], [1], [0, 0, 1, 1], [], []>} : vector<64x32xf32>, vector<32x18xf32>, vector<64x18xf32> -> vector<64x18xf32>
    %84 = arith.addf %79, %83 : vector<64x18xf32>
    %c5_58 = arith.constant 5 : index
    %c0_59 = arith.constant 0 : index
    %c0_60 = arith.constant 0 : index
    %85 = vector.load %arg5[%c5_58, %c0_59, %c0_60] : memref<10x64x32xf32, #tpu.memory_space<vmem>>, vector<1x64x32xf32>
    %86 = vector.shape_cast %85 : vector<1x64x32xf32> to vector<64x32xf32>
    %87 = vector.extract_strided_slice %60 {offsets = [0, 5], sizes = [32, 18], strides = [1, 1]} : vector<32x27xf32> to vector<32x18xf32>
    %cst_61 = arith.constant dense<0.000000e+00> : vector<64x18xf32>
    %88 = tpu.matmul %86, %87, %cst_61 {dimension_numbers = #tpu.dot_dimension_numbers<[1], [0], [0], [1], [0, 0, 1, 1], [], []>} : vector<64x32xf32>, vector<32x18xf32>, vector<64x18xf32> -> vector<64x18xf32>
    %89 = arith.addf %84, %88 : vector<64x18xf32>
    %c6_62 = arith.constant 6 : index
    %c0_63 = arith.constant 0 : index
    %c0_64 = arith.constant 0 : index
    %90 = vector.load %arg5[%c6_62, %c0_63, %c0_64] : memref<10x64x32xf32, #tpu.memory_space<vmem>>, vector<1x64x32xf32>
    %91 = vector.shape_cast %90 : vector<1x64x32xf32> to vector<64x32xf32>
    %92 = vector.extract_strided_slice %60 {offsets = [0, 6], sizes = [32, 18], strides = [1, 1]} : vector<32x27xf32> to vector<32x18xf32>
    %cst_65 = arith.constant dense<0.000000e+00> : vector<64x18xf32>
    %93 = tpu.matmul %91, %92, %cst_65 {dimension_numbers = #tpu.dot_dimension_numbers<[1], [0], [0], [1], [0, 0, 1, 1], [], []>} : vector<64x32xf32>, vector<32x18xf32>, vector<64x18xf32> -> vector<64x18xf32>
    %94 = arith.addf %89, %93 : vector<64x18xf32>
    %c7_66 = arith.constant 7 : index
    %c0_67 = arith.constant 0 : index
    %c0_68 = arith.constant 0 : index
    %95 = vector.load %arg5[%c7_66, %c0_67, %c0_68] : memref<10x64x32xf32, #tpu.memory_space<vmem>>, vector<1x64x32xf32>
    %96 = vector.shape_cast %95 : vector<1x64x32xf32> to vector<64x32xf32>
    %97 = vector.extract_strided_slice %60 {offsets = [0, 7], sizes = [32, 18], strides = [1, 1]} : vector<32x27xf32> to vector<32x18xf32>
    %cst_69 = arith.constant dense<0.000000e+00> : vector<64x18xf32>
    %98 = tpu.matmul %96, %97, %cst_69 {dimension_numbers = #tpu.dot_dimension_numbers<[1], [0], [0], [1], [0, 0, 1, 1], [], []>} : vector<64x32xf32>, vector<32x18xf32>, vector<64x18xf32> -> vector<64x18xf32>
    %99 = arith.addf %94, %98 : vector<64x18xf32>
    %c8_70 = arith.constant 8 : index
    %c0_71 = arith.constant 0 : index
    %c0_72 = arith.constant 0 : index
    %100 = vector.load %arg5[%c8_70, %c0_71, %c0_72] : memref<10x64x32xf32, #tpu.memory_space<vmem>>, vector<1x64x32xf32>
    %101 = vector.shape_cast %100 : vector<1x64x32xf32> to vector<64x32xf32>
    %102 = vector.extract_strided_slice %60 {offsets = [0, 8], sizes = [32, 18], strides = [1, 1]} : vector<32x27xf32> to vector<32x18xf32>
    %cst_73 = arith.constant dense<0.000000e+00> : vector<64x18xf32>
    %103 = tpu.matmul %101, %102, %cst_73 {dimension_numbers = #tpu.dot_dimension_numbers<[1], [0], [0], [1], [0, 0, 1, 1], [], []>} : vector<64x32xf32>, vector<32x18xf32>, vector<64x18xf32> -> vector<64x18xf32>
    %104 = arith.addf %99, %103 : vector<64x18xf32>
    %c9_74 = arith.constant 9 : index
    %c0_75 = arith.constant 0 : index
    %c0_76 = arith.constant 0 : index
    %105 = vector.load %arg5[%c9_74, %c0_75, %c0_76] : memref<10x64x32xf32, #tpu.memory_space<vmem>>, vector<1x64x32xf32>
    %106 = vector.shape_cast %105 : vector<1x64x32xf32> to vector<64x32xf32>
    %107 = vector.extract_strided_slice %60 {offsets = [0, 9], sizes = [32, 18], strides = [1, 1]} : vector<32x27xf32> to vector<32x18xf32>
    %cst_77 = arith.constant dense<0.000000e+00> : vector<64x18xf32>
    %108 = tpu.matmul %106, %107, %cst_77 {dimension_numbers = #tpu.dot_dimension_numbers<[1], [0], [0], [1], [0, 0, 1, 1], [], []>} : vector<64x32xf32>, vector<32x18xf32>, vector<64x18xf32> -> vector<64x18xf32>
    %109 = arith.addf %104, %108 : vector<64x18xf32>
    %c0_78 = arith.constant 0 : index
    %c0_79 = arith.constant 0 : index
    %110 = vector.load %arg6[%c0_78, %c0_79] : memref<64x1xf32, #tpu.memory_space<vmem>>, vector<64x1xf32>
    %111 = vector.broadcast %110 : vector<64x1xf32> to vector<64x18xf32>
    %112 = arith.mulf %109, %111 : vector<64x18xf32>
    %c0_80 = arith.constant 0 : index
    %c0_81 = arith.constant 0 : index
    %113 = vector.load %arg7[%c0_80, %c0_81] : memref<64x1xf32, #tpu.memory_space<vmem>>, vector<64x1xf32>
    %114 = vector.broadcast %113 : vector<64x1xf32> to vector<64x18xf32>
    %115 = arith.addf %112, %114 : vector<64x18xf32>
    %cst_82 = arith.constant 0.000000e+00 : f32
    %116 = vector.broadcast %cst_82 : f32 to vector<64x18xf32>
    %117 = arith.maximumf %115, %116 : vector<64x18xf32>
    %cst_83 = arith.constant dense<0.000000e+00> : vector<64xf32>
    %118 = vector.multi_reduction <add>, %117, %cst_83 [1] : vector<64x18xf32> to vector<64xf32>
    %119 = vector.shape_cast %118 : vector<64xf32> to vector<64x1xf32>
    %cst_84 = arith.constant 0.055555556 : f32
    %120 = vector.broadcast %cst_84 : f32 to vector<64x1xf32>
    %121 = arith.mulf %119, %120 : vector<64x1xf32>
    %c0_85 = arith.constant 0 : index
    %c0_86 = arith.constant 0 : index
    %122 = vector.load %arg8[%c0_85, %c0_86] : memref<128x64xf32, #tpu.memory_space<vmem>>, vector<128x64xf32>
    %cst_87 = arith.constant dense<0.000000e+00> : vector<128x1xf32>
    %123 = tpu.matmul %122, %121, %cst_87 {dimension_numbers = #tpu.dot_dimension_numbers<[1], [0], [0], [1], [0, 0, 1, 1], [], []>} : vector<128x64xf32>, vector<64x1xf32>, vector<128x1xf32> -> vector<128x1xf32>
    %c0_88 = arith.constant 0 : index
    %c0_89 = arith.constant 0 : index
    %124 = vector.load %arg9[%c0_88, %c0_89] : memref<128x1xf32, #tpu.memory_space<vmem>>, vector<128x1xf32>
    %125 = arith.addf %123, %124 : vector<128x1xf32>
    %cst_90 = arith.constant 0.000000e+00 : f32
    %126 = vector.broadcast %cst_90 : f32 to vector<128x1xf32>
    %127 = arith.maximumf %125, %126 : vector<128x1xf32>
    %c0_91 = arith.constant 0 : index
    %c0_92 = arith.constant 0 : index
    %128 = vector.load %arg10[%c0_91, %c0_92] : memref<64x128xf32, #tpu.memory_space<vmem>>, vector<64x128xf32>
    %cst_93 = arith.constant dense<0.000000e+00> : vector<64x1xf32>
    %129 = tpu.matmul %128, %127, %cst_93 {dimension_numbers = #tpu.dot_dimension_numbers<[1], [0], [0], [1], [0, 0, 1, 1], [], []>} : vector<64x128xf32>, vector<128x1xf32>, vector<64x1xf32> -> vector<64x1xf32>
    %c0_94 = arith.constant 0 : index
    %c0_95 = arith.constant 0 : index
    %130 = vector.load %arg11[%c0_94, %c0_95] : memref<64x1xf32, #tpu.memory_space<vmem>>, vector<64x1xf32>
    %131 = arith.addf %129, %130 : vector<64x1xf32>
    %cst_96 = arith.constant 0.000000e+00 : f32
    %132 = vector.broadcast %cst_96 : f32 to vector<64x1xf32>
    %133 = arith.maximumf %131, %132 : vector<64x1xf32>
    %c0_97 = arith.constant 0 : index
    %c0_98 = arith.constant 0 : index
    %134 = vector.load %arg12[%c0_97, %c0_98] : memref<64x1xf32, #tpu.memory_space<vmem>>, vector<64x1xf32>
    %135 = arith.mulf %134, %133 : vector<64x1xf32>
    %cst_99 = arith.constant dense<0.000000e+00> : vector<1xf32>
    %136 = vector.multi_reduction <add>, %135, %cst_99 [0] : vector<64x1xf32> to vector<1xf32>
    %137 = vector.shape_cast %136 : vector<1xf32> to vector<1x1xf32>
    %c0_100 = arith.constant 0 : index
    %c0_101 = arith.constant 0 : index
    %138 = vector.load %arg13[%c0_100, %c0_101] : memref<1x1xf32, #tpu.memory_space<vmem>>, vector<1x1xf32>
    %139 = arith.addf %137, %138 : vector<1x1xf32>
    %140 = vector.shape_cast %139 : vector<1x1xf32> to vector<1x1x1xf32>
    %141 = vector.shape_cast %140 : vector<1x1x1xf32> to vector<1x1x1xf32>
    %142 = vector.broadcast %141 : vector<1x1x1xf32> to vector<1x1x128xf32>
    %c0_102 = arith.constant 0 : index
    %c0_103 = arith.constant 0 : index
    %c0_104 = arith.constant 0 : index
    %143 = vector.load %arg14[%c0_102, %c0_103, %c0_104] : memref<1x1x128xf32, #tpu.memory_space<vmem>>, vector<1x1x128xf32>
    tpu.vector_store %arg14[%c0_102, %c0_103, %c0_104], %142 {strides = array<i32>} : memref<1x1x128xf32, #tpu.memory_space<vmem>>, vector<1x1x128xf32>,
    return
  }
  func.func @transform_0(%arg0: i32) -> (i32, i32, i32) {
    %c0_i32 = arith.constant 0 : i32
    %c0_i32_0 = arith.constant 0 : i32
    %c0_i32_1 = arith.constant 0 : i32
    return %arg0, %c0_i32, %c0_i32_0 : i32, i32, i32
  }
  func.func @transform_1(%arg0: i32) -> (i32, i32, i32) {
    %c0_i32 = arith.constant 0 : i32
    %c0_i32_0 = arith.constant 0 : i32
    %c0_i32_1 = arith.constant 0 : i32
    %c0_i32_2 = arith.constant 0 : i32
    return %c0_i32, %c0_i32_0, %c0_i32_1 : i32, i32, i32
  }
  func.func @transform_2(%arg0: i32) -> (i32, i32) {
    %c0_i32 = arith.constant 0 : i32
    %c0_i32_0 = arith.constant 0 : i32
    %c0_i32_1 = arith.constant 0 : i32
    return %c0_i32, %c0_i32_0 : i32, i32
  }
  func.func @transform_3(%arg0: i32) -> (i32, i32) {
    %c0_i32 = arith.constant 0 : i32
    %c0_i32_0 = arith.constant 0 : i32
    %c0_i32_1 = arith.constant 0 : i32
    return %c0_i32, %c0_i32_0 : i32, i32
  }
  func.func @transform_4(%arg0: i32) -> (i32, i32, i32) {
    %c0_i32 = arith.constant 0 : i32
    %c0_i32_0 = arith.constant 0 : i32
    %c0_i32_1 = arith.constant 0 : i32
    %c0_i32_2 = arith.constant 0 : i32
    return %c0_i32, %c0_i32_0, %c0_i32_1 : i32, i32, i32
  }
  func.func @transform_5(%arg0: i32) -> (i32, i32) {
    %c0_i32 = arith.constant 0 : i32
    %c0_i32_0 = arith.constant 0 : i32
    %c0_i32_1 = arith.constant 0 : i32
    return %c0_i32, %c0_i32_0 : i32, i32
  }
  func.func @transform_6(%arg0: i32) -> (i32, i32) {
    %c0_i32 = arith.constant 0 : i32
    %c0_i32_0 = arith.constant 0 : i32
    %c0_i32_1 = arith.constant 0 : i32
    return %c0_i32, %c0_i32_0 : i32, i32
  }
  func.func @transform_7(%arg0: i32) -> (i32, i32) {
    %c0_i32 = arith.constant 0 : i32
    %c0_i32_0 = arith.constant 0 : i32
    %c0_i32_1 = arith.constant 0 : i32
    return %c0_i32, %c0_i32_0 : i32, i32
  }
  func.func @transform_8(%arg0: i32) -> (i32, i32) {
    %c0_i32 = arith.constant 0 : i32
    %c0_i32_0 = arith.constant 0 : i32
    %c0_i32_1 = arith.constant 0 : i32
    return %c0_i32, %c0_i32_0 : i32, i32
  }
  func.func @transform_9(%arg0: i32) -> (i32, i32) {
    %c0_i32 = arith.constant 0 : i32
    %c0_i32_0 = arith.constant 0 : i32
    %c0_i32_1 = arith.constant 0 : i32
    return %c0_i32, %c0_i32_0 : i32, i32
  }
  func.func @transform_10(%arg0: i32) -> (i32, i32) {
    %c0_i32 = arith.constant 0 : i32
    %c0_i32_0 = arith.constant 0 : i32
    %c0_i32_1 = arith.constant 0 : i32
    return %c0_i32, %c0_i32_0 : i32, i32
  }
  func.func @transform_11(%arg0: i32) -> (i32, i32) {
    %c0_i32 = arith.constant 0 : i32
    %c0_i32_0 = arith.constant 0 : i32
    %c0_i32_1 = arith.constant 0 : i32
    return %c0_i32, %c0_i32_0 : i32, i32
  }
  func.func @transform_12(%arg0: i32) -> (i32, i32) {
    %c0_i32 = arith.constant 0 : i32
    %c0_i32_0 = arith.constant 0 : i32
    %c0_i32_1 = arith.constant 0 : i32
    return %c0_i32, %c0_i32_0 : i32, i32
  }
  func.func @transform_13(%arg0: i32) -> (i32, i32, i32) {
    %c0_i32 = arith.constant 0 : i32
    %c0_i32_0 = arith.constant 0 : i32
    %c0_i32_1 = arith.constant 0 : i32
    return %arg0, %c0_i32, %c0_i32_0 : i32, i32, i32
  }
}

</mosaic_0001>

<bundles_post_ra>
// kernel: convnn_forward.1
= control target key start
LH: loop header
LB: loop body
LE: loop exit
PB: predicated region body
PF: predicated region fallthrough
CT: control target
= control target key end

     0   :  { %s2918_s27 = smov 0   ;;  %s3786_s0 = inlined_call_operand.vmem [shape: f32[4,4,34], index: 0, kind: input, shape index: {}]   ;;  %s3787_s1 = inlined_call_operand.vmem [shape: f32[10,32,4], index: 1, kind: input, shape index: {}]   ;;  %s3788_s2 = inlined_call_operand.vmem [shape: f32[32,1], index: 2, kind: input, shape index: {}]   ;;  %s3789_s3 = inlined_call_operand.vmem [shape: f32[32,1], index: 3, kind: input, shape index: {}]   ;;  %s3790_s4 = inlined_call_operand.vmem [shape: f32[10,64,32], index: 4, kind: input, shape index: {}]   ;;  %s3791_s5 = inlined_call_operand.vmem [shape: f32[64,1], index: 5, kind: input, shape index: {}]   ;;  %s3792_s6 = inlined_call_operand.vmem [shape: f32[64,1], index: 6, kind: input, shape index: {}]   ;;  %s3793_s7 = inlined_call_operand.vmem [shape: f32[128,64], index: 7, kind: input, shape index: {}]   ;;  %s3794_s8 = inlined_call_operand.vmem [shape: f32[128,1], index: 8, kind: input, shape index: {}]   ;;  %s3795_s9 = inlined_call_operand.vmem [shape: f32[64,128], index: 9, kind: input, shape index: {}]   ;;  %s3796_s10 = inlined_call_operand.vmem [shape: f32[64,1], index: 10, kind: input, shape index: {}]   ;;  %s3797_s11 = inlined_call_operand.vmem [shape: f32[64,1], index: 11, kind: input, shape index: {}]   ;;  %s3798_s12 = inlined_call_operand.<no memory space> [shape: f32[1,1], index: 12, kind: input, shape index: {}]   ;;  %s3799_s13 = inlined_call_operand.vmem [shape: f32[4,1,128], index: 13, kind: output, shape index: {}]  }
   0x1   :  { %v18_v0 = vstv %s3798_s12 }
   0x2   :  { %19 = vst [vmem:[#allocation2] sm:$0x1] %v18_v0 }
   0x3 LB: > { %s2443_s28 = sadd.s32 4294967295, %s2832_s27   ;;  %p2447_p0 = scmp.ge.s32.totalorder %s2832_s27, 1  ;;  %s2832_s27 = sphi %s2918_s27, %s25_s27  }
   0x4   : > { %p388_p1 = scmp.lt.s32.totalorder %s2832_s27, 5 }
   0x6   : > { %p389_p2 = pnand %p2447_p0, %p388_p1 }
   0x7   : > { %p429_p3 = scmp.lt.s32.totalorder (!%p389_p2), %s2443_s28, 3  ;;  %s2834_s15 = smov (!%p389_p2), 127  }
   0x8   : > { %392 = sbr.rel (%p389_p2) target bundleno = 1720 (0x6b8), region = 72  ;;  %s2835_s16 = smov (!%p389_p2), 125  }
   0x9   : > { %s2836_s17 = smov (!%p389_p2), 123   ;;  %s2837_s18 = smov (!%p389_p2), 126  }
   0xa   : > { %s2838_s19 = smov (!%p389_p2), 124   ;;  %s2839_s20 = smov (!%p389_p2), 122  }
   0xb   : > { %s3804_s21 = smov (!%p389_p2), 121   ;;  %s3802_s22 = smov (!%p389_p2), 120  }
   0xc   : > { %s3800_s23 = smov (!%p389_p2), 119  }
   0xd   : > { %s3810_s28 = smov (!%p429_p3, %s2443_s28), 3  ;;  %vm462_vm0 = vcmask 1043456   ;;  %vm449_vm1 = vcmask 31744   ;;  %v437_v2 = vld [vmem:[%s3787_s1] sm:$0xff]  ;;  %v438_v3 = vld [vmem:[%s3787_s1 + $0x8] sm:$0xff]  ;;  %v439_v4 = vld [vmem:[%s3787_s1 + $0x10] sm:$0xff] }
   0xe   : > { %s2448_s12 = sshll.u32 %s3810_s28, 2  ;;  %v440_v6 = vld [vmem:[%s3787_s1 + $0x18] sm:$0xff]  ;;  %v2449_v7 = vld [vmem:[%s3787_s1 + $0x20] sm:$0xff]  ;;  %v2450_v10 = vld [vmem:[%s3787_s1 + $0x28] sm:$0xff]  ;;  %v2843_v37 = vmov 0   ;;  %vm1045_vm2 = vcmask 7168  }
   0xf   : > { %s432_s14 = scalar_lea.vmem %s3786_s0, %s2448_s12  ;;  %v2463_v11 = vld [vmem:[%s3787_s1 + $0x40] sm:$0xff]  ;;  %v2465_v13 = vld [vmem:[%s3787_s1 + $0x50] sm:$0xff]  ;;  %v2464_v18 = vld [vmem:[%s3787_s1 + $0x48] sm:$0xff]  ;;  %2733 = vset.pattern.permute.xlu0 %v2843_v37  ;;  %2734 = vset.pattern.permute.xlu1 %v2843_v37  ;;  %vm1050_vm3 = vcmask 211968   ;;  %vm1088_vm4 = vcmask 261120   ;;  %vm2091_vm5 = vcmask 146432  }
  0x10   : > { %v436_v1 = vld [vmem:[%s432_s14] sm:$0xf]  ;;  %v2451_v17 = vld [vmem:[%s3787_s1 + $0x30] sm:$0xff]  ;;  %v2466_v19 = vld [vmem:[%s3787_s1 + $0x58] sm:$0xff]  ;;  %2735 = vset.pattern.permute.xlu2 %v2843_v37  ;;  %vm2156_vm6 = vcmask 523264   ;;  %s435_s14 = scalar_lea.vmem %s3799_s13, %s3810_s28 }
  0x11   : > { %447 = vrot.lane.b32.xlu0 %v436_v1, %s2834_s15  ;;  %596 = vrot.lane.b32.xlu1 %v436_v1, %s2835_s16  ;;  %v2490_v16 = vld [vmem:[%s3787_s1 + $0xa0] sm:$0xff]  ;;  %v2491_v20 = vld [vmem:[%s3787_s1 + $0xa8] sm:$0xff] }
  0x12   : > { %704 = vrot.lane.b32.xlu2 %v436_v1, %s2836_s17  ;;  %2458 = vmatpush.msk.msra.mxu1 %vm462_vm0, %v436_v1  ;;  %v2452_v21 = vld [vmem:[%s3787_s1 + $0x38] sm:$0xff]  ;;  %v2481_v22 = vld [vmem:[%s3787_s1 + $0x80] sm:$0xff]  ;;  %v2492_v24 = vld [vmem:[%s3787_s1 + $0xb0] sm:$0xff] }
  0x13   : > { %2459 = vmatmul.msk.f32.vlgmr.msra.gmra.mxu1 %vm449_vm1, %v437_v2  ;;  %v2499_v23 = vld [vmem:[%s3787_s1 + $0xc0] sm:$0xff]  ;;  %v2482_v27 = vld [vmem:[%s3787_s1 + $0x88] sm:$0xff]  ;;  %v2493_v29 = vld [vmem:[%s3787_s1 + $0xb8] sm:$0xff] }
  0x14   : > { %v2472_v26 = vld [vmem:[%s3787_s1 + $0x60] sm:$0xff]  ;;  %v2500_v28 = vld [vmem:[%s3787_s1 + $0xc8] sm:$0xff]  ;;  %v2483_v33 = vld [vmem:[%s3787_s1 + $0x90] sm:$0xff] }
  0x15   : > { %v2473_v32 = vld [vmem:[%s3787_s1 + $0x68] sm:$0xff]  ;;  %v2501_v34 = vld [vmem:[%s3787_s1 + $0xd0] sm:$0xff]  ;;  %v2526_v35 = vld [vmem:[%s3787_s1 + $0x120] sm:$0xff] }
  0x16   : > { %v972_v36 = vld [vmem:[%s3788_s2 + $0x18] sm:$0xff]  ;;  %v2474_v38 = vld [vmem:[%s3787_s1 + $0x70] sm:$0xff]  ;;  %v2527_v42 = vld [vmem:[%s3787_s1 + $0x128] sm:$0xff] }
  0x17   : > { %v2484_v39 = vld [vmem:[%s3787_s1 + $0x98] sm:$0xff]  ;;  %v971_v41 = vld [vmem:[%s3788_s2 + $0x10] sm:$0xff]  ;;  %v969_v43 = vld [vmem:[%s3788_s2] sm:$0xff] }
  0x18   : > { %v2502_v40 = vld [vmem:[%s3787_s1 + $0xd8] sm:$0xff]  ;;  %v2517_v45 = vld [vmem:[%s3787_s1 + $0x100] sm:$0xff]  ;;  %v970_v46 = vld [vmem:[%s3788_s2 + $0x8] sm:$0xff] }
  0x19   : > { %542 = vrot.lane.b32.xlu0 %v436_v1, %s2837_s18  ;;  %650 = vrot.lane.b32.xlu1 %v436_v1, %s2838_s19  ;;  %v2475_v44 = vld [vmem:[%s3787_s1 + $0x78] sm:$0xff]  ;;  %v2528_v47 = vld [vmem:[%s3787_s1 + $0x130] sm:$0xff] }
  0x1a   : > { %758 = vrot.lane.b32.xlu2 %v436_v1, %s2839_s20  ;;  %v1000_v48 = vld [vmem:[%s3789_s3 + $0x18] sm:$0xff]  ;;  %v2508_v49 = vld [vmem:[%s3787_s1 + $0xe0] sm:$0xff]  ;;  %v2518_v50 = vld [vmem:[%s3787_s1 + $0x108] sm:$0xff] }
  0x1b   : > { %2460 = vmatmul.msk.f32.gmra.mxu1 %vm449_vm1, %v438_v3  ;;  %v998_v51 = vld [vmem:[%s3789_s3 + $0x8] sm:$0xff]  ;;  %v2529_v52 = vld [vmem:[%s3787_s1 + $0x138] sm:$0xff]  ;;  %v999_v53 = vld [vmem:[%s3789_s3 + $0x10] sm:$0xff] }
  0x1c   : > { %v2509_v54 = vld [vmem:[%s3787_s1 + $0xe8] sm:$0xff]  ;;  %v2519_v55 = vld [vmem:[%s3787_s1 + $0x110] sm:$0xff]  ;;  %v997_v56 = vld [vmem:[%s3789_s3] sm:$0xff] }
  0x1d   : > { %v2510_v57 = vld [vmem:[%s3787_s1 + $0xf0] sm:$0xff]  ;;  %v2520_v58 = vld [vmem:[%s3787_s1 + $0x118] sm:$0xff] }
  0x1e   : > { %v2511_v59 = vld [vmem:[%s3787_s1 + $0xf8] sm:$0xff] }
  0x21   : > { %812 = vrot.lane.b32.xlu0 %v436_v1, %s3804_s21  ;;  %866 = vrot.lane.b32.xlu1 %v436_v1, %s3802_s22  ;;  %s3806_s21 = smov 121   ;;  %s3807_s22 = smov 120  }
  0x22   : > { %920 = vrot.lane.b32.xlu2 %v436_v1, %s3800_s23  ;;  %s2844_s23 = smov 1  }
  0x23   : > { %2461 = vmatmul.msk.f32.gmra.mxu1 %vm449_vm1, %v439_v4 }
  0x29   : > { %990 = vperm.xlu0 %2733, %v972_v36   ;;  %985 = vperm.xlu1 %2734, %v971_v41  }
  0x2a   : > { %1018 = vperm.xlu2 %2735, %v1000_v48  }
  0x2b   : > { %2462 = vmatmul.msk.f32.gmra.mxu1 %vm449_vm1, %v440_v6 }
  0x31   : > { %975 = vperm.xlu0 %2733, %v969_v43   ;;  %980 = vperm.xlu1 %2734, %v970_v46  }
  0x32   : > { %1013 = vperm.xlu2 %2735, %v999_v53  }
  0x39   : > { %1008 = vperm.xlu1 %2734, %v998_v51  }
  0x3a   : > { %1003 = vperm.xlu2 %2735, %v997_v56  }
  0x6c   : > { %v705_v5 = vpop.permute.xlu2 %704 }
  0x6d   : > { %2494 = vmatpush.msk.msrb.mxu1 %vm462_vm0, %v705_v5 }
  0x6e   : > { %2495 = vmatmul.msk.f32.vlgmr.msrb.gmra.mxu1 %vm449_vm1, %v2490_v16 }
  0x74   : > { %v759_v15 = vpop.permute.xlu2 %758 }
  0x76   : > { %2496 = vmatmul.msk.f32.gmra.mxu1 %vm449_vm1, %v2491_v20 }
  0x7c   : > { %v921_v31 = vpop.permute.xlu2 %920 }
  0x7d   : > { %2530 = vmatpush.msk.msra.mxu1 %vm462_vm0, %v921_v31 }
  0x7e   : > { %2497 = vmatmul.msk.f32.gmra.mxu1 %vm449_vm1, %v2492_v24 }
  0x83   : > { %v448_v8 = vpop.permute.xlu0 %447  ;;  %v597_v9 = vpop.permute.xlu1 %596 }
  0x84   : > { %2453 = vmatpush.msk.msra.mxu3 %vm462_vm0, %v448_v8  ;;  %v1019_v51 = vpop.permute.xlu2 %1018 }
  0x85   : > { %2454 = vmatmul.msk.f32.vlgmr.msra.gmra.mxu3 %vm449_vm1, %v2449_v7 }
  0x86   : > { %2476 = vmatpush.msk.msrb.mxu3 %vm462_vm0, %v597_v9  ;;  %2498 = vmatmul.msk.f32.gmra.mxu1 %vm449_vm1, %v2493_v29 }
  0x8b   : > { %v543_v12 = vpop.permute.xlu0 %542  ;;  %v651_v14 = vpop.permute.xlu1 %650 }
  0x8c   : > { %2467 = vmatpush.msk.msra.mxu0 %vm462_vm0, %v543_v12  ;;  %2709 = vmatpush.msk.msra.mxu2 %vm462_vm0, %v543_v12 }
  0x8d   : > { %2455 = vmatmul.msk.f32.gmra.mxu3 %vm449_vm1, %v2450_v10  ;;  %2468 = vmatmul.msk.f32.vlgmr.msra.gmra.mxu0 %vm449_vm1, %v2463_v11 }
  0x8e   : > { %2470 = vmatmul.msk.f32.vlgmr.msra.gmra.mxu2 %vm449_vm1, %v2465_v13  ;;  %2485 = vmatpush.msk.msrb.mxu0 %vm462_vm0, %v651_v14 }
  0x8f   : > { %2503 = vmatpush.msk.msrb.mxu2 %vm462_vm0, %v759_v15  ;;  %2531 = vmatmul.msk.f32.vlgmr.msra.gmra.mxu1 %vm449_vm1, %v2526_v35 }
  0x90   : > { %v525_v60 = vpop.f32.mrf.mxu1 }
  0x93   : > { %v813_v25 = vpop.permute.xlu0 %812  ;;  %v867_v30 = vpop.permute.xlu1 %866 }
  0x94   : > { %2512 = vmatpush.msk.msra.mxu3 %vm462_vm0, %v813_v25  ;;  %2521 = vmatpush.msk.msra.mxu0 %vm462_vm0, %v867_v30 }
  0x95   : > { %2456 = vmatmul.msk.f32.gmra.mxu3 %vm449_vm1, %v2451_v17  ;;  %2469 = vmatmul.msk.f32.gmra.mxu0 %vm449_vm1, %v2464_v18 }
  0x96   : > { %2471 = vmatmul.msk.f32.gmra.mxu2 %vm449_vm1, %v2466_v19 }
  0x97   : > { %2532 = vmatmul.msk.f32.gmra.mxu1 %vm449_vm1, %v2527_v42 }
  0x98   : > { %v528_v61 = vpop.f32.mrf.mxu1 }
  0x9d   : > { %2457 = vmatmul.msk.f32.gmra.mxu3 %vm449_vm1, %v2452_v21  ;;  %2486 = vmatmul.msk.f32.vlgmr.msrb.gmra.mxu0 %vm449_vm1, %v2481_v22 }
  0x9e   : > { %2504 = vmatmul.msk.f32.vlgmr.msrb.gmra.mxu2 %vm449_vm1, %v2499_v23  ;;  %v986_v23 = vpop.permute.xlu1 %985 }
  0x9f   : > { %2533 = vmatmul.msk.f32.gmra.mxu1 %vm449_vm1, %v2528_v47 }
  0xa0   : > { %v531_v0 = vpop.f32.mrf.mxu1 }
  0xa5   : > { %2477 = vmatmul.msk.f32.vlgmr.msrb.gmra.mxu3 %vm449_vm1, %v2472_v26  ;;  %2487 = vmatmul.msk.f32.gmra.mxu0 %vm449_vm1, %v2482_v27 }
  0xa6   : > { %2505 = vmatmul.msk.f32.gmra.mxu2 %vm449_vm1, %v2500_v28  ;;  %v981_v35 = vpop.permute.xlu1 %980 }
  0xa7   : > { %2534 = vmatmul.msk.f32.gmra.mxu1 %vm449_vm1, %v2529_v52 }
  0xa8   : > { %v534_v3 = vpop.f32.mrf.mxu1 }
  0xad   : > { %2478 = vmatmul.msk.f32.gmra.mxu3 %vm449_vm1, %v2473_v32  ;;  %2488 = vmatmul.msk.f32.gmra.mxu0 %vm449_vm1, %v2483_v33 }
  0xae   : > { %2506 = vmatmul.msk.f32.gmra.mxu2 %vm449_vm1, %v2501_v34  ;;  %v1009_v53 = vpop.permute.xlu1 %1008 }
  0xb5   : > { %2479 = vmatmul.msk.f32.gmra.mxu3 %vm449_vm1, %v2474_v38  ;;  %2489 = vmatmul.msk.f32.gmra.mxu0 %vm449_vm1, %v2484_v39 }
  0xb6   : > { %2507 = vmatmul.msk.f32.gmra.mxu2 %vm449_vm1, %v2502_v40 }
  0xbd   : > { %2480 = vmatmul.msk.f32.gmra.mxu3 %vm449_vm1, %v2475_v44  ;;  %2522 = vmatmul.msk.f32.vlgmr.msra.gmra.mxu0 %vm449_vm1, %v2517_v45 }
  0xc5   : > { %2513 = vmatmul.msk.f32.vlgmr.msra.gmra.mxu3 %vm449_vm1, %v2508_v49  ;;  %2523 = vmatmul.msk.f32.gmra.mxu0 %vm449_vm1, %v2518_v50 }
  0xcd   : > { %2514 = vmatmul.msk.f32.gmra.mxu3 %vm449_vm1, %v2509_v54  ;;  %2524 = vmatmul.msk.f32.gmra.mxu0 %vm449_vm1, %v2519_v55 }
  0xd5   : > { %2515 = vmatmul.msk.f32.gmra.mxu3 %vm449_vm1, %v2510_v57  ;;  %2525 = vmatmul.msk.f32.gmra.mxu0 %vm449_vm1, %v2520_v58 }
  0xdd   : > { %2516 = vmatmul.msk.f32.gmra.mxu3 %vm449_vm1, %v2511_v59 }
  0xeb   : > { %v737_v6 = vpop.f32.mrf.mxu1 }
  0xf3   : > { %v740_v9 = vpop.f32.mrf.mxu1 }
  0xfb   : > { %v743_v14 = vpop.f32.mrf.mxu1 }
 0x103   : > { %v746_v18 = vpop.f32.mrf.mxu1 }
 0x108   : > { %v482_v62 = vpop.f32.mrf.mxu3 }
 0x109   : > { %v526_v32 = vadd.f32 %v525_v60, %v482_v62 }
 0x10a   : > { %v575_v63 = vpop.f32.mrf.mxu0 }
 0x10b   : > { %v587_v39 = vadd.f32 %v575_v63, %v526_v32 }
 0x10c   : > { %v953_v26 = vpop.f32.mrf.mxu1 }
 0x110   : > { %v485_v1 = vpop.f32.mrf.mxu3 }
 0x111   : > { %v581_v11 = vpop.f32.mrf.mxu2  ;;  %v529_v19 = vadd.f32 %v528_v61, %v485_v1 }
 0x112   : > { %v578_v2 = vpop.f32.mrf.mxu0 }
 0x113   : > { %v588_v22 = vadd.f32 %v578_v2, %v529_v19 }
 0x114   : > { %v956_v38 = vpop.f32.mrf.mxu1 }
 0x118   : > { %v488_v4 = vpop.f32.mrf.mxu3 }
 0x119   : > { %v584_v15 = vpop.f32.mrf.mxu2  ;;  %v532_v27 = vadd.f32 %v531_v0, %v488_v4 }
 0x11a   : > { %v683_v5 = vpop.f32.mrf.mxu0 }
 0x11b   : > { %v589_v31 = vadd.f32 %v581_v11, %v532_v27 }
 0x11c   : > { %v959_v59 = vpop.f32.mrf.mxu1 }
 0x120   : > { %v491_v7 = vpop.f32.mrf.mxu3 }
 0x121   : > { %v791_v20 = vpop.f32.mrf.mxu2  ;;  %v535_v37 = vadd.f32 %v534_v3, %v491_v7 }
 0x122   : > { %v686_v8 = vpop.f32.mrf.mxu0 }
 0x123   : > { %v590_v43 = vadd.f32 %v584_v15, %v535_v37 }
 0x128   : > { %v629_v10 = vpop.f32.mrf.mxu3 }
 0x129   : > { %v794_v29 = vpop.f32.mrf.mxu2  ;;  %v641_v44 = vadd.f32 %v629_v10, %v587_v39 }
 0x12a   : > { %v689_v12 = vpop.f32.mrf.mxu0 }
 0x12b   : > { %v695_v50 = vadd.f32 %v683_v5, %v641_v44  ;;  %v991_v5 = vpop.permute.xlu0 %990  ;;  %v1975_v44 = vld [vmem:[%s3791_s5 + $0x20] sm:$0xff] }
 0x12d   : > { %v749_v60 = vadd.f32 %v737_v6, %v695_v50  ;;  %v962_v6 = vpop.f32.mrf.mxu1  ;;  %v1972_v50 = vld [vmem:[%s3791_s5 + $0x8] sm:$0xff] }
 0x12f   : > { %v803_v3 = vadd.f32 %v791_v20, %v749_v60  ;;  %v1056_v60 = vld [vmem:[%s3790_s4 + $0x8] sm:$0xff] }
 0x130   : > { %v632_v13 = vpop.f32.mrf.mxu3 }
 0x131   : > { %v642_v25 = vadd.f32 %v632_v13, %v588_v22  ;;  %v797_v46 = vpop.f32.mrf.mxu2 }
 0x132   : > { %v692_v17 = vpop.f32.mrf.mxu0 }
 0x133   : > { %v696_v28 = vadd.f32 %v686_v8, %v642_v25  ;;  %v1014_v8 = vpop.permute.xlu2 %1013 }
 0x135   : > { %v750_v33 = vadd.f32 %v740_v9, %v696_v28 }
 0x137   : > { %v804_v40 = vadd.f32 %v794_v29, %v750_v33 }
 0x138   : > { %v635_v16 = vpop.f32.mrf.mxu3 }
 0x139   : > { %v643_v34 = vadd.f32 %v635_v16, %v589_v31  ;;  %v800_v2 = vpop.f32.mrf.mxu2 }
 0x13a   : > { %v899_v24 = vpop.f32.mrf.mxu0 }
 0x13b   : > { %v697_v41 = vadd.f32 %v689_v12, %v643_v34  ;;  %v1004_v28 = vpop.permute.xlu2 %1003 }
 0x13d   : > { %v751_v47 = vadd.f32 %v743_v14, %v697_v41 }
 0x13f   : > { %v805_v55 = vadd.f32 %v797_v46, %v751_v47  ;;  %v1977_v46 = vld [vmem:[%s3791_s5 + $0x30] sm:$0xff]  ;;  %v2031_v47 = vld [vmem:[%s3792_s6 + $0x20] sm:$0xff] }
 0x140   : > { %v638_v21 = vpop.f32.mrf.mxu3 }
 0x141   : > { %v644_v48 = vadd.f32 %v638_v21, %v590_v43  ;;  %v976_v21 = vpop.permute.xlu0 %975  ;;  %v1978_v43 = vld [vmem:[%s3791_s5 + $0x38] sm:$0xff] }
 0x142   : > { %v902_v36 = vpop.f32.mrf.mxu0 }
 0x143   : > { %v698_v56 = vadd.f32 %v692_v17, %v644_v48  ;;  %v2032_v48 = vld [vmem:[%s3792_s6 + $0x28] sm:$0xff] }
 0x145   : > { %v752_v63 = vadd.f32 %v746_v18, %v698_v56  ;;  %v2027_v56 = vld [vmem:[%s3792_s6] sm:$0xff] }
 0x147   : > { %v806_v7 = vadd.f32 %v800_v2, %v752_v63  ;;  %v1057_v63 = vld [vmem:[%s3790_s4 + $0x10] sm:$0xff] }
 0x148   : > { %v845_v30 = vpop.f32.mrf.mxu3 }
 0x149   : > { %v857_v9 = vadd.f32 %v845_v30, %v803_v3 }
 0x14a   : > { %v905_v54 = vpop.f32.mrf.mxu0 }
 0x14b   : > { %v911_v15 = vadd.f32 %v899_v24, %v857_v9 }
 0x14d   : > { %v965_v19 = vadd.f32 %v953_v26, %v911_v15 }
 0x14f   : > { %v993_v25 = vmul.f32 %v976_v21, %v965_v19 }
 0x150   : > { %v848_v42 = vpop.f32.mrf.mxu3 }
 0x151   : > { %v858_v45 = vadd.f32 %v848_v42, %v804_v40  ;;  %v1021_v29 = vadd.f32 %v1004_v28, %v993_v25  ;;  %v2034_v42 = vld [vmem:[%s3792_s6 + $0x38] sm:$0xff]  ;;  %v2579_v28 = vld [vmem:[%s3790_s4 + $0xc0] sm:$0xff] }
 0x152   : > { %v908_v12 = vpop.f32.mrf.mxu0 }
 0x153   : > { %v912_v49 = vadd.f32 %v902_v36, %v858_v45  ;;  %v1976_v45 = vld [vmem:[%s3791_s5 + $0x28] sm:$0xff] }
 0x155   : > { %v966_v52 = vadd.f32 %v956_v38, %v912_v49  ;;  %v2033_v49 = vld [vmem:[%s3792_s6 + $0x30] sm:$0xff] }
 0x157   : > { %v994_v57 = vmul.f32 %v981_v35, %v966_v52  ;;  %v1974_v52 = vld [vmem:[%s3791_s5 + $0x18] sm:$0xff] }
 0x158   : > { %v851_v58 = vpop.f32.mrf.mxu3 }
 0x159   : > { %v1022_v61 = vadd.f32 %v1009_v53, %v994_v57  ;;  %v859_v62 = vadd.f32 %v851_v58, %v805_v55  ;;  %v2028_v53 = vld [vmem:[%s3792_s6 + $0x8] sm:$0xff]  ;;  %v2030_v55 = vld [vmem:[%s3792_s6 + $0x18] sm:$0xff]  ;;  %v1971_v57 = vld [vmem:[%s3791_s5] sm:$0xff] }
 0x15a   : > { %v1055_v58 = vld [vmem:[%s3790_s4] sm:$0xff] }
 0x15b   : > { %v1026_v0 = vmax.f32 %v1022_v61, 0.0  ;;  %v913_v1 = vadd.f32 %v905_v54, %v859_v62  ;;  %v2029_v54 = vld [vmem:[%s3792_s6 + $0x10] sm:$0xff] }
 0x15d   : > { %v967_v4 = vadd.f32 %v959_v59, %v913_v1  ;;  %1035 = vrot.lane.b32.xlu2 %v1026_v0, %s2844_s23 }
 0x15f   : > { %v995_v10 = vmul.f32 %v986_v23, %v967_v4  ;;  %v1025_v23 = vmax.f32 %v1021_v29, 0.0 }
 0x160   : > { %v854_v11 = vpop.f32.mrf.mxu3 }
 0x161   : > { %v860_v13 = vadd.f32 %v854_v11, %v806_v7  ;;  %v1023_v14 = vadd.f32 %v1014_v8, %v995_v10  ;;  %v2535_v10 = vld [vmem:[%s3790_s4 + $0x40] sm:$0xff] }
 0x163   : > { %v914_v16 = vadd.f32 %v908_v12, %v860_v13  ;;  %v1027_v17 = vmax.f32 %v1023_v14, 0.0 }
 0x165   : > { %v968_v18 = vadd.f32 %v962_v6, %v914_v16  ;;  %1037 = vrot.lane.b32.xlu1 %v1027_v17, %s2844_s23  ;;  %v1059_v16 = vld [vmem:[%s3790_s4 + $0x20] sm:$0xff] }
 0x167   : > { %v996_v20 = vmul.f32 %v991_v5, %v968_v18  ;;  %v1058_v5 = vld [vmem:[%s3790_s4 + $0x18] sm:$0xff] }
 0x169   : > { %v1024_v22 = vadd.f32 %v1019_v51, %v996_v20  ;;  %v1973_v51 = vld [vmem:[%s3791_s5 + $0x10] sm:$0xff] }
 0x16b   : > { %v1028_v27 = vmax.f32 %v1024_v22, 0.0 }
 0x16d   : > { %1039 = vrot.lane.b32.xlu0 %v1028_v27, %s2844_s23  ;;  %v2536_v27 = vld [vmem:[%s3790_s4 + $0x48] sm:$0xff] }
 0x175   : > { %1033 = vrot.lane.b32.xlu0 %v1025_v23, %s2844_s23 }
 0x1b7   : > { %v1036_v33 = vpop.permute.xlu2 %1035 }
 0x1b8   : > { %v1047_v36 = vsel %vm1045_vm2, 0.0, %v1036_v33 }
 0x1b9   : > { %v1052_v39 = vsel %vm1050_vm3, %v1047_v36, 0.0 }
 0x1d7   : > { %v1038_v30 = vpop.permute.xlu1 %1037 }
 0x1d8   : > { %v1048_v31 = vsel %vm1045_vm2, 0.0, %v1038_v30 }
 0x1d9   : > { %v1053_v26 = vsel %vm1050_vm3, %v1048_v31, 0.0 }
 0x1df   : > { %v1040_v24 = vpop.permute.xlu0 %1039 }
 0x1e0   : > { %v1049_v32 = vsel %vm1045_vm2, 0.0, %v1040_v24 }
 0x1e1   : > { %v1054_v34 = vsel %vm1050_vm3, %v1049_v32, 0.0  ;;  %2551 = vmatpush.msk.msrb.mxu3 %vm1050_vm3, %v1049_v32  ;;  %v1060_v32 = vld [vmem:[%s3790_s4 + $0x28] sm:$0xff] }
 0x1e2   : > { %v2736_v35 = vpack.i.bf16 %v1053_v26, %v1054_v34 }
 0x1e3   : > { %2552 = vmatpush.msk.msrb.mxu3 %vm1050_vm3, %v1048_v31 }
 0x1e4   : > { %2737 = vrot.lane.b32.xlu1 %v2736_v35, %s2834_s15  ;;  %2747 = vrot.lane.b32.xlu0 %v2736_v35, %s2838_s19 }
 0x1e5   : > { %2553 = vmatpush.msk.msrb.mxu3 %vm1050_vm3, %v1047_v36  ;;  %v2537_v36 = vld [vmem:[%s3790_s4 + $0x50] sm:$0xff] }
 0x1e7   : > { %v1034_v37 = vpop.permute.xlu0 %1033 }
 0x1e8   : > { %v1046_v38 = vsel %vm1045_vm2, 0.0, %v1034_v37  ;;  %v2580_v37 = vld [vmem:[%s3790_s4 + $0xc8] sm:$0xff] }
 0x1e9   : > { %v1051_v40 = vsel %vm1050_vm3, %v1046_v38, 0.0  ;;  %2554 = vmatpush.msk.msrb.mxu3 %vm1050_vm3, %v1046_v38 }
 0x1ea   : > { %v2751_v41 = vpack.i.bf16 %v1051_v40, %v1052_v39  ;;  %2555 = vmatmul.msk.f32.vlgmr.msrb.gmra.mxu3 %vm1088_vm4, %v1055_v58 }
 0x1ec   : > { %2762 = vrot.lane.b32.xlu0 %v2736_v35, %s2835_s16  ;;  %2752 = vrot.lane.b32.xlu1 %v2751_v41, %s2838_s19 }
 0x1ed   : > { %2742 = vrot.lane.b32.xlu2 %v2751_v41, %s2834_s15  ;;  %s3808_s15 = smov 119  }
 0x1f2   : > { %2556 = vmatmul.msk.f32.gmra.mxu3 %vm1088_vm4, %v1056_v60 }
 0x1f4   : > { %2777 = vrot.lane.b32.xlu0 %v2736_v35, %s2839_s20  ;;  %2767 = vrot.lane.b32.xlu1 %v2751_v41, %s2836_s17 }
 0x1f5   : > { %2757 = vrot.lane.b32.xlu2 %v2736_v35, %s2836_s17 }
 0x1fa   : > { %2557 = vmatmul.msk.f32.gmra.mxu3 %vm1088_vm4, %v1057_v63  ;;  %v2540_v63 = vld [vmem:[%s3790_s4 + $0x68] sm:$0xff] }
 0x1fc   : > { %2787 = vrot.lane.b32.xlu0 %v2751_v41, %s2837_s18  ;;  %2782 = vrot.lane.b32.xlu1 %v2751_v41, %s2839_s20 }
 0x1fd   : > { %2772 = vrot.lane.b32.xlu2 %v2751_v41, %s2835_s16 }
 0x202   : > { %2558 = vmatmul.msk.f32.gmra.mxu3 %vm1088_vm4, %v1058_v5  ;;  %v2567_v5 = vld [vmem:[%s3790_s4 + $0xa0] sm:$0xff] }
 0x204   : > { %2817 = vrot.lane.b32.xlu0 %v2736_v35, %s3806_s21  ;;  %2797 = vrot.lane.b32.xlu1 %v2736_v35, %s3807_s22 }
 0x205   : > { %2792 = vrot.lane.b32.xlu2 %v2736_v35, %s2837_s18 }
 0x20a   : > { %2559 = vmatmul.msk.f32.gmra.mxu3 %vm1088_vm4, %v1059_v16 }
 0x20c   : > { %2822 = vrot.lane.b32.xlu0 %v2751_v41, %s3806_s21  ;;  %2802 = vrot.lane.b32.xlu1 %v2751_v41, %s3807_s22 }
 0x20d   : > { %2807 = vrot.lane.b32.xlu2 %v2736_v35, %s3808_s15 }
 0x212   : > { %2560 = vmatmul.msk.f32.gmra.mxu3 %vm1088_vm4, %v1060_v32  ;;  %v2618_v32 = vld [vmem:[%s3790_s4 + $0x178] sm:$0xff] }
 0x214   : > { %2072 = vperm.xlu0 %2733, %v2034_v42   ;;  %2016 = vperm.xlu1 %2734, %v1978_v43  }
 0x215   : > { %2812 = vrot.lane.b32.xlu2 %v2751_v41, %s3808_s15 }
 0x21c   : > { %2001 = vperm.xlu0 %2733, %v1975_v44   ;;  %2006 = vperm.xlu1 %2734, %v1976_v45  }
 0x21d   : > { %2011 = vperm.xlu2 %2735, %v1977_v46   ;;  %v2563_v46 = vld [vmem:[%s3790_s4 + $0x80] sm:$0xff] }
 0x224   : > { %2057 = vperm.xlu0 %2733, %v2031_v47   ;;  %2062 = vperm.xlu1 %2734, %v2032_v48   ;;  %v1061_v48 = vld [vmem:[%s3790_s4 + $0x30] sm:$0xff] }
 0x225   : > { %2067 = vperm.xlu2 %2735, %v2033_v49   ;;  %v2538_v49 = vld [vmem:[%s3790_s4 + $0x58] sm:$0xff]  ;;  %2561 = vmatmul.msk.f32.gmra.mxu3 %vm1088_vm4, %v1061_v48  ;;  %v2649_v48 = vld [vmem:[%s3790_s4 + $0x1f0] sm:$0xff] }
 0x22c   : > { %1986 = vperm.xlu0 %2733, %v1972_v50   ;;  %1991 = vperm.xlu1 %2734, %v1973_v51   ;;  %v2581_v50 = vld [vmem:[%s3790_s4 + $0xd0] sm:$0xff] }
 0x22d   : > { %1996 = vperm.xlu2 %2735, %v1974_v52  }
 0x234   : > { %2042 = vperm.xlu0 %2733, %v2028_v53   ;;  %2047 = vperm.xlu1 %2734, %v2029_v54   ;;  %v2564_v54 = vld [vmem:[%s3790_s4 + $0x88] sm:$0xff] }
 0x235   : > { %2052 = vperm.xlu2 %2735, %v2030_v55   ;;  %v1062_v55 = vld [vmem:[%s3790_s4 + $0x38] sm:$0xff] }
 0x236   : > { %2562 = vmatmul.msk.f32.gmra.mxu3 %vm1088_vm4, %v1062_v55 }
 0x23c   : > { %2037 = vperm.xlu1 %2734, %v2027_v56   ;;  %v2539_v56 = vld [vmem:[%s3790_s4 + $0x60] sm:$0xff] }
 0x23d   : > { %1981 = vperm.xlu2 %2735, %v1971_v57   ;;  %v2582_v57 = vld [vmem:[%s3790_s4 + $0xd8] sm:$0xff] }
 0x247   : > { %v2743_v59 = vpop.permute.xlu2 %2742 }
 0x248   : > { %v2744_v8 = vunpack.i.l.bf16 %v2743_v59  ;;  %v2745_v9 = vunpack.i.h.bf16 %v2743_v59 }
 0x24f   : > { %v2758_v61 = vpop.permute.xlu2 %2757 }
 0x250   : > { %v2759_v62 = vunpack.i.l.bf16 %v2758_v61  ;;  %v2760_v0 = vunpack.i.h.bf16 %v2758_v61  ;;  %v2565_v61 = vld [vmem:[%s3790_s4 + $0x90] sm:$0xff] }
 0x252   : > { %1558 = vmatpush.msra.mxu3 %v2759_v62  ;;  %v2611_v62 = vld [vmem:[%s3790_s4 + $0x140] sm:$0xff] }
 0x254   : > { %1559 = vmatpush.msra.mxu3 %v2760_v0  ;;  %v2583_v0 = vld [vmem:[%s3790_s4 + $0xe0] sm:$0xff] }
 0x256   : > { %v2738_v1 = vpop.permute.xlu1 %2737  ;;  %v2748_v2 = vpop.permute.xlu0 %2747 }
 0x257   : > { %v2739_v3 = vunpack.i.l.bf16 %v2738_v1  ;;  %v2773_v4 = vpop.permute.xlu2 %2772  ;;  %v2740_v7 = vunpack.i.h.bf16 %v2738_v1  ;;  %v2749_v13 = vunpack.i.l.bf16 %v2748_v2  ;;  %v2750_v17 = vunpack.i.h.bf16 %v2748_v2  ;;  %v2566_v1 = vld [vmem:[%s3790_s4 + $0x98] sm:$0xff]  ;;  %v2612_v2 = vld [vmem:[%s3790_s4 + $0x148] sm:$0xff] }
 0x258   : > { %v2774_v20 = vunpack.i.l.bf16 %v2773_v4  ;;  %v2775_v22 = vunpack.i.h.bf16 %v2773_v4  ;;  %v2584_v4 = vld [vmem:[%s3790_s4 + $0xe8] sm:$0xff] }
 0x259   : > { %1125 = vmatpush.msra.mxu2 %v2739_v3  ;;  %v2541_v3 = vld [vmem:[%s3790_s4 + $0x70] sm:$0xff] }
 0x25b   : > { %1126 = vmatpush.msra.mxu2 %v2740_v7  ;;  %v2613_v7 = vld [vmem:[%s3790_s4 + $0x150] sm:$0xff] }
 0x25d   : > { %1127 = vmatpush.msra.mxu2 %v2744_v8  ;;  %v2542_v8 = vld [vmem:[%s3790_s4 + $0x78] sm:$0xff] }
 0x25e   : > { %v2753_v11 = vpop.permute.xlu1 %2752  ;;  %v2763_v12 = vpop.permute.xlu0 %2762 }
 0x25f   : > { %v2793_v14 = vpop.permute.xlu2 %2792  ;;  %v2764_v6 = vunpack.i.l.bf16 %v2763_v12  ;;  %1128 = vmatpush.msra.mxu2 %v2745_v9  ;;  %v2765_v18 = vunpack.i.h.bf16 %v2763_v12  ;;  %v2754_v21 = vunpack.i.l.bf16 %v2753_v11  ;;  %v2755_v25 = vunpack.i.h.bf16 %v2753_v11  ;;  %v2585_v9 = vld [vmem:[%s3790_s4 + $0xf0] sm:$0xff]  ;;  %v2568_v11 = vld [vmem:[%s3790_s4 + $0xa8] sm:$0xff]  ;;  %v2614_v12 = vld [vmem:[%s3790_s4 + $0x158] sm:$0xff] }
 0x260   : > { %v2794_v15 = vunpack.i.l.bf16 %v2793_v14  ;;  %2543 = vmatmul.msk.f32.vlgmr.msra.gmra.mxu2 %vm1088_vm4, %v2535_v10  ;;  %v2795_v19 = vunpack.i.h.bf16 %v2793_v14  ;;  %v2586_v14 = vld [vmem:[%s3790_s4 + $0xf8] sm:$0xff] }
 0x261   : > { %1464 = vmatpush.msrb.mxu2 %v2749_v13  ;;  %1370 = vmatpush.msrb.mxu1 %v2764_v6  ;;  %v2595_v13 = vld [vmem:[%s3790_s4 + $0x100] sm:$0xff] }
 0x262   : > { %1276 = vmatpush.msrb.mxu0 %v2794_v15 }
 0x263   : > { %1465 = vmatpush.msrb.mxu2 %v2750_v17  ;;  %1371 = vmatpush.msrb.mxu1 %v2765_v18  ;;  %v2569_v17 = vld [vmem:[%s3790_s4 + $0xb0] sm:$0xff]  ;;  %v2615_v18 = vld [vmem:[%s3790_s4 + $0x160] sm:$0xff] }
 0x264   : > { %1277 = vmatpush.msrb.mxu0 %v2795_v19 }
 0x265   : > { %1466 = vmatpush.msrb.mxu2 %v2754_v21  ;;  %1372 = vmatpush.msrb.mxu1 %v2774_v20  ;;  %v2596_v21 = vld [vmem:[%s3790_s4 + $0x108] sm:$0xff] }
 0x266   : > { %v2768_v29 = vpop.permute.xlu1 %2767  ;;  %v2778_v23 = vpop.permute.xlu0 %2777 }
 0x267   : > { %v2769_v30 = vunpack.i.l.bf16 %v2768_v29  ;;  %v2808_v31 = vpop.permute.xlu2 %2807  ;;  %v2779_v24 = vunpack.i.l.bf16 %v2778_v23  ;;  %1467 = vmatpush.msrb.mxu2 %v2755_v25  ;;  %1373 = vmatpush.msrb.mxu1 %v2775_v22  ;;  %v2770_v33 = vunpack.i.h.bf16 %v2768_v29  ;;  %v2780_v26 = vunpack.i.h.bf16 %v2778_v23  ;;  %v2643_v22 = vld [vmem:[%s3790_s4 + $0x1c0] sm:$0xff]  ;;  %v2570_v25 = vld [vmem:[%s3790_s4 + $0xb8] sm:$0xff]  ;;  %v2644_v29 = vld [vmem:[%s3790_s4 + $0x1c8] sm:$0xff] }
 0x268   : > { %2544 = vmatmul.msk.f32.gmra.mxu2 %vm1088_vm4, %v2536_v27  ;;  %2587 = vmatmul.msk.f32.vlgmr.msrb.gmra.mxu1 %vm1088_vm4, %v2579_v28  ;;  %v2809_v34 = vunpack.i.l.bf16 %v2808_v31  ;;  %v2810_v35 = vunpack.i.h.bf16 %v2808_v31  ;;  %v2616_v27 = vld [vmem:[%s3790_s4 + $0x168] sm:$0xff]  ;;  %v2597_v28 = vld [vmem:[%s3790_s4 + $0x110] sm:$0xff]  ;;  %v2627_v23 = vld [vmem:[%s3790_s4 + $0x180] sm:$0xff] }
 0x269   : > { %1560 = vmatpush.msra.mxu3 %v2769_v30  ;;  %2710 = vmatpush.msra.mxu2 %v2779_v24  ;;  %v2617_v30 = vld [vmem:[%s3790_s4 + $0x170] sm:$0xff]  ;;  %v2598_v31 = vld [vmem:[%s3790_s4 + $0x118] sm:$0xff] }
 0x26b   : > { %1561 = vmatpush.msra.mxu3 %v2770_v33  ;;  %2711 = vmatpush.msra.mxu2 %v2780_v26  ;;  %v2599_v33 = vld [vmem:[%s3790_s4 + $0x120] sm:$0xff] }
 0x26c   : > { %2619 = vmatmul.msk.f32.vlgmr.msra.gmra.mxu3 %vm1088_vm4, %v2611_v62 }
 0x26d   : > { %1934 = vmatpush.msrb.mxu3 %v2809_v34  ;;  %v2645_v34 = vld [vmem:[%s3790_s4 + $0x1d0] sm:$0xff] }
 0x26e   : > { %v2783_v38 = vpop.permute.xlu1 %2782  ;;  %v2788_v39 = vpop.permute.xlu0 %2787 }
 0x26f   : > { %1935 = vmatpush.msrb.mxu3 %v2810_v35  ;;  %v2784_v40 = vunpack.i.l.bf16 %v2783_v38  ;;  %v2813_v41 = vpop.permute.xlu2 %2812  ;;  %v2789_v42 = vunpack.i.l.bf16 %v2788_v39  ;;  %v2785_v44 = vunpack.i.h.bf16 %v2783_v38  ;;  %v2790_v45 = vunpack.i.h.bf16 %v2788_v39  ;;  %v2601_v35 = vld [vmem:[%s3790_s4 + $0x130] sm:$0xff]  ;;  %v2602_v38 = vld [vmem:[%s3790_s4 + $0x138] sm:$0xff] }
 0x270   : > { %v2814_v43 = vunpack.i.l.bf16 %v2813_v41  ;;  %2545 = vmatmul.msk.f32.gmra.mxu2 %vm1088_vm4, %v2537_v36  ;;  %2588 = vmatmul.msk.f32.gmra.mxu1 %vm1088_vm4, %v2580_v37  ;;  %v2815_v47 = vunpack.i.h.bf16 %v2813_v41  ;;  %v1195_v36 = vpop.f32.mrf.mxu3  ;;  %v2646_v37 = vld [vmem:[%s3790_s4 + $0x1d8] sm:$0xff]  ;;  %v2629_v41 = vld [vmem:[%s3790_s4 + $0x190] sm:$0xff] }
 0x271   : > { %1278 = vmatpush.msrb.mxu0 %v2789_v42  ;;  %2712 = vmatpush.msra.mxu2 %v2784_v40  ;;  %v2648_v42 = vld [vmem:[%s3790_s4 + $0x1e8] sm:$0xff] }
 0x272   : > { %1936 = vmatpush.msrb.mxu3 %v2814_v43 }
 0x273   : > { %1279 = vmatpush.msrb.mxu0 %v2790_v45  ;;  %2713 = vmatpush.msra.mxu2 %v2785_v44 }
 0x274   : > { %1937 = vmatpush.msrb.mxu3 %v2815_v47  ;;  %2571 = vmatmul.msk.f32.vlgmr.msrb.gmra.mxu0 %vm1088_vm4, %v2563_v46  ;;  %v2630_v46 = vld [vmem:[%s3790_s4 + $0x198] sm:$0xff] }
 0x275   : > { %1652 = vmatpush.msra.mxu0 %v2779_v24  ;;  %2620 = vmatmul.msk.f32.gmra.mxu3 %vm1088_vm4, %v2612_v2  ;;  %v2628_v24 = vld [vmem:[%s3790_s4 + $0x188] sm:$0xff] }
 0x276   : > { %v2818_v51 = vpop.permute.xlu0 %2817  ;;  %v2798_v10 = vpop.permute.xlu1 %2797  ;;  %v2676_v2 = vld [vmem:[%s3790_s4 + $0x248] sm:$0xff] }
 0x277   : > { %v2819_v52 = vunpack.i.l.bf16 %v2818_v51  ;;  %1653 = vmatpush.msra.mxu0 %v2780_v26  ;;  %v2820_v53 = vunpack.i.h.bf16 %v2818_v51  ;;  %v2799_v6 = vunpack.i.l.bf16 %v2798_v10  ;;  %v2800_v16 = vunpack.i.h.bf16 %v2798_v10  ;;  %v2600_v26 = vld [vmem:[%s3790_s4 + $0x128] sm:$0xff] }
 0x278   : > { %2546 = vmatmul.msk.f32.gmra.mxu2 %vm1088_vm4, %v2538_v49  ;;  %2589 = vmatmul.msk.f32.gmra.mxu1 %vm1088_vm4, %v2581_v50  ;;  %v1198_v39 = vpop.f32.mrf.mxu3 }
 0x279   : > { %1654 = vmatpush.msra.mxu0 %v2784_v40  ;;  %1746 = vmatpush.msra.mxu1 %v2819_v52  ;;  %v2647_v40 = vld [vmem:[%s3790_s4 + $0x1e0] sm:$0xff] }
 0x27a   : > { %v2631_v52 = vld [vmem:[%s3790_s4 + $0x1a0] sm:$0xff] }
 0x27b   : > { %1655 = vmatpush.msra.mxu0 %v2785_v44  ;;  %1747 = vmatpush.msra.mxu1 %v2820_v53 }
 0x27c   : > { %2572 = vmatmul.msk.f32.gmra.mxu0 %vm1088_vm4, %v2564_v54  ;;  %v2650_v54 = vld [vmem:[%s3790_s4 + $0x1f8] sm:$0xff] }
 0x27d   : > { %2621 = vmatmul.msk.f32.gmra.mxu3 %vm1088_vm4, %v2613_v7  ;;  %v2633_v7 = vld [vmem:[%s3790_s4 + $0x1b0] sm:$0xff] }
 0x27e   : > { %v2823_v58 = vpop.permute.xlu0 %2822  ;;  %v2803_v15 = vpop.permute.xlu1 %2802 }
 0x27f   : > { %v2824_v59 = vunpack.i.l.bf16 %v2823_v58  ;;  %v2825_v60 = vunpack.i.h.bf16 %v2823_v58  ;;  %v2804_v19 = vunpack.i.l.bf16 %v2803_v15  ;;  %v2805_v20 = vunpack.i.h.bf16 %v2803_v15  ;;  %v2634_v15 = vld [vmem:[%s3790_s4 + $0x1b8] sm:$0xff] }
 0x280   : > { %2547 = vmatmul.msk.f32.gmra.mxu2 %vm1088_vm4, %v2539_v56  ;;  %2590 = vmatmul.msk.f32.gmra.mxu1 %vm1088_vm4, %v2582_v57  ;;  %v1201_v43 = vpop.f32.mrf.mxu3  ;;  %v2675_v57 = vld [vmem:[%s3790_s4 + $0x240] sm:$0xff] }
 0x281   : > { %1748 = vmatpush.msra.mxu1 %v2824_v59 }
 0x283   : > { %1749 = vmatpush.msra.mxu1 %v2825_v60 }
 0x284   : > { %2573 = vmatmul.msk.f32.gmra.mxu0 %vm1088_vm4, %v2565_v61  ;;  %v2632_v61 = vld [vmem:[%s3790_s4 + $0x1a8] sm:$0xff] }
 0x285   : > { %2622 = vmatmul.msk.f32.gmra.mxu3 %vm1088_vm4, %v2614_v12  ;;  %v2677_v12 = vld [vmem:[%s3790_s4 + $0x250] sm:$0xff] }
 0x288   : > { %2548 = vmatmul.msk.f32.gmra.mxu2 %vm1088_vm4, %v2540_v63  ;;  %2591 = vmatmul.msk.f32.gmra.mxu1 %vm1088_vm4, %v2583_v0  ;;  %v1204_v51 = vpop.f32.mrf.mxu3 }
 0x28c   : > { %2574 = vmatmul.msk.f32.gmra.mxu0 %vm1088_vm4, %v2566_v1 }
 0x28d   : > { %2623 = vmatmul.msk.f32.gmra.mxu3 %vm1088_vm4, %v2615_v18 }
 0x290   : > { %2549 = vmatmul.msk.f32.gmra.mxu2 %vm1088_vm4, %v2541_v3  ;;  %2592 = vmatmul.msk.f32.gmra.mxu1 %vm1088_vm4, %v2584_v4  ;;  %v1207_v63 = vpop.f32.mrf.mxu3 }
 0x294   : > { %2575 = vmatmul.msk.f32.gmra.mxu0 %vm1088_vm4, %v2567_v5 }
 0x295   : > { %2624 = vmatmul.msk.f32.gmra.mxu3 %vm1088_vm4, %v2616_v27  ;;  %v2659_v27 = vld [vmem:[%s3790_s4 + $0x200] sm:$0xff] }
 0x298   : > { %2550 = vmatmul.msk.f32.gmra.mxu2 %vm1088_vm4, %v2542_v8  ;;  %2593 = vmatmul.msk.f32.gmra.mxu1 %vm1088_vm4, %v2585_v9  ;;  %v1210_v9 = vpop.f32.mrf.mxu3 }
 0x29c   : > { %2576 = vmatmul.msk.f32.gmra.mxu0 %vm1088_vm4, %v2568_v11 }
 0x29d   : > { %2625 = vmatmul.msk.f32.gmra.mxu3 %vm1088_vm4, %v2617_v30 }
 0x2a0   : > { %2603 = vmatmul.msk.f32.vlgmr.msrb.gmra.mxu2 %vm1088_vm4, %v2595_v13  ;;  %2594 = vmatmul.msk.f32.gmra.mxu1 %vm1088_vm4, %v2586_v14 }
 0x2a1   : > { %1840 = vmatpush.msrb.mxu2 %v2799_v6 }
 0x2a3   : > { %1841 = vmatpush.msrb.mxu2 %v2800_v16 }
 0x2a4   : > { %2577 = vmatmul.msk.f32.gmra.mxu0 %vm1088_vm4, %v2569_v17 }
 0x2a5   : > { %1842 = vmatpush.msrb.mxu2 %v2804_v19  ;;  %2626 = vmatmul.msk.f32.gmra.mxu3 %vm1088_vm4, %v2618_v32  ;;  %v2660_v32 = vld [vmem:[%s3790_s4 + $0x208] sm:$0xff] }
 0x2a7   : > { %1843 = vmatpush.msrb.mxu2 %v2805_v20  ;;  %v2678_v20 = vld [vmem:[%s3790_s4 + $0x258] sm:$0xff] }
 0x2a8   : > { %2604 = vmatmul.msk.f32.gmra.mxu2 %vm1088_vm4, %v2596_v21  ;;  %2651 = vmatmul.msk.f32.vlgmr.msra.gmra.mxu1 %vm1088_vm4, %v2643_v22  ;;  %v1213_v19 = vpop.f32.mrf.mxu3 }
 0x2ac   : > { %2578 = vmatmul.msk.f32.gmra.mxu0 %vm1088_vm4, %v2570_v25 }
 0x2ad   : > { %2683 = vmatmul.msk.f32.vlgmr.msrb.gmra.mxu3 %vm1088_vm4, %v2675_v57 }
 0x2b0   : > { %2605 = vmatmul.msk.f32.gmra.mxu2 %vm1088_vm4, %v2597_v28  ;;  %2652 = vmatmul.msk.f32.gmra.mxu1 %vm1088_vm4, %v2644_v29  ;;  %v2679_v29 = vld [vmem:[%s3790_s4 + $0x260] sm:$0xff] }
 0x2b4   : > { %2635 = vmatmul.msk.f32.vlgmr.msra.gmra.mxu0 %vm1088_vm4, %v2627_v23 }
 0x2b5   : > { %2684 = vmatmul.msk.f32.gmra.mxu3 %vm1088_vm4, %v2676_v2 }
 0x2b8   : > { %2606 = vmatmul.msk.f32.gmra.mxu2 %vm1088_vm4, %v2598_v31  ;;  %2653 = vmatmul.msk.f32.gmra.mxu1 %vm1088_vm4, %v2645_v34 }
 0x2bc   : > { %2636 = vmatmul.msk.f32.gmra.mxu0 %vm1088_vm4, %v2628_v24  ;;  %v1216_v24 = vpop.f32.mrf.mxu3 }
 0x2bd   : > { %2685 = vmatmul.msk.f32.gmra.mxu3 %vm1088_vm4, %v2677_v12 }
 0x2c0   : > { %2607 = vmatmul.msk.f32.gmra.mxu2 %vm1088_vm4, %v2599_v33  ;;  %2654 = vmatmul.msk.f32.gmra.mxu1 %vm1088_vm4, %v2646_v37  ;;  %v2661_v37 = vld [vmem:[%s3790_s4 + $0x210] sm:$0xff] }
 0x2c5   : > { %2686 = vmatmul.msk.f32.gmra.mxu3 %vm1088_vm4, %v2678_v20 }
 0x2c8   : > { %2608 = vmatmul.msk.f32.gmra.mxu2 %vm1088_vm4, %v2600_v26  ;;  %2655 = vmatmul.msk.f32.gmra.mxu1 %vm1088_vm4, %v2647_v40  ;;  %v2680_v26 = vld [vmem:[%s3790_s4 + $0x268] sm:$0xff] }
 0x2cd   : > { %2687 = vmatmul.msk.f32.gmra.mxu3 %vm1088_vm4, %v2679_v29 }
 0x2d0   : > { %2609 = vmatmul.msk.f32.gmra.mxu2 %vm1088_vm4, %v2601_v35  ;;  %2656 = vmatmul.msk.f32.gmra.mxu1 %vm1088_vm4, %v2648_v42 }
 0x2d5   : > { %2688 = vmatmul.msk.f32.gmra.mxu3 %vm1088_vm4, %v2680_v26 }
 0x2d8   : > { %2610 = vmatmul.msk.f32.gmra.mxu2 %vm1088_vm4, %v2602_v38  ;;  %2657 = vmatmul.msk.f32.gmra.mxu1 %vm1088_vm4, %v2649_v48 }
 0x2e0   : > { %2637 = vmatmul.msk.f32.vlgmr.msra.gmra.mxu2 %vm1088_vm4, %v2629_v41  ;;  %2658 = vmatmul.msk.f32.gmra.mxu1 %vm1088_vm4, %v2650_v54 }
 0x2e3   : > { %v1130_v44 = vpop.f32.mrf.mxu2 }
 0x2e4   : > { %v1196_v45 = vadd.f32 %v1195_v36, %v1130_v44 }
 0x2e5   : > { %v1375_v47 = vpop.f32.mrf.mxu1 }
 0x2e8   : > { %2638 = vmatmul.msk.f32.gmra.mxu2 %vm1088_vm4, %v2630_v46 }
 0x2eb   : > { %v1133_v49 = vpop.f32.mrf.mxu2 }
 0x2ec   : > { %v1199_v50 = vadd.f32 %v1198_v39, %v1133_v49  ;;  %v2681_v39 = vld [vmem:[%s3790_s4 + $0x270] sm:$0xff] }
 0x2ed   : > { %v1378_v53 = vpop.f32.mrf.mxu1  ;;  %2689 = vmatmul.msk.f32.gmra.mxu3 %vm1088_vm4, %v2681_v39 }
 0x2ef   : > { %v1563_v36 = vpop.f32.mrf.mxu3 }
 0x2f0   : > { %2639 = vmatmul.msk.f32.gmra.mxu2 %vm1088_vm4, %v2631_v52 }
 0x2f1   : > { %v1281_v55 = vpop.f32.mrf.mxu0 }
 0x2f2   : > { %v1305_v56 = vadd.f32 %v1281_v55, %v1196_v45 }
 0x2f3   : > { %v1136_v58 = vpop.f32.mrf.mxu2 }
 0x2f4   : > { %v1202_v59 = vadd.f32 %v1201_v43, %v1136_v58  ;;  %v1399_v60 = vadd.f32 %v1375_v47, %v1305_v56  ;;  %v2662_v43 = vld [vmem:[%s3790_s4 + $0x218] sm:$0xff] }
 0x2f5   : > { %v1381_v62 = vpop.f32.mrf.mxu1  ;;  %v2682_v47 = vld [vmem:[%s3790_s4 + $0x278] sm:$0xff] }
 0x2f6   : > { %2690 = vmatmul.msk.f32.gmra.mxu3 %vm1088_vm4, %v2682_v47 }
 0x2f8   : > { %2640 = vmatmul.msk.f32.gmra.mxu2 %vm1088_vm4, %v2632_v61  ;;  %v1566_v45 = vpop.f32.mrf.mxu3 }
 0x2f9   : > { %v1284_v0 = vpop.f32.mrf.mxu0 }
 0x2fa   : > { %v1306_v1 = vadd.f32 %v1284_v0, %v1199_v50 }
 0x2fb   : > { %v1139_v3 = vpop.f32.mrf.mxu2 }
 0x2fc   : > { %v1205_v4 = vadd.f32 %v1204_v51, %v1139_v3  ;;  %v1400_v5 = vadd.f32 %v1378_v53, %v1306_v1  ;;  %v2663_v51 = vld [vmem:[%s3790_s4 + $0x220] sm:$0xff]  ;;  %v2665_v1 = vld [vmem:[%s3790_s4 + $0x230] sm:$0xff] }
 0x2fd   : > { %v1384_v8 = vpop.f32.mrf.mxu1 }
 0x300   : > { %2641 = vmatmul.msk.f32.gmra.mxu2 %vm1088_vm4, %v2633_v7  ;;  %v1569_v53 = vpop.f32.mrf.mxu3 }
 0x301   : > { %v1287_v10 = vpop.f32.mrf.mxu0 }
 0x302   : > { %v1307_v11 = vadd.f32 %v1287_v10, %v1202_v59 }
 0x303   : > { %v1142_v13 = vpop.f32.mrf.mxu2 }
 0x304   : > { %v3478_v14 = vadd.f32 %v1207_v63, %v1142_v13  ;;  %v1401_v6 = vadd.f32 %v1381_v62, %v1307_v11 }
 0x305   : > { %v3484_v17 = vpop.f32.mrf.mxu1 }
 0x308   : > { %2642 = vmatmul.msk.f32.gmra.mxu2 %vm1088_vm4, %v2634_v15  ;;  %v1572_v63 = vpop.f32.mrf.mxu3 }
 0x309   : > { %v1290_v16 = vpop.f32.mrf.mxu0 }
 0x30a   : > { %v1308_v18 = vadd.f32 %v1290_v16, %v1205_v4 }
 0x30b   : > { %v1145_v21 = vpop.f32.mrf.mxu2 }
 0x30c   : > { %v1211_v22 = vadd.f32 %v1210_v9, %v1145_v21  ;;  %v1402_v25 = vadd.f32 %v1384_v8, %v1308_v18  ;;  %v2666_v8 = vld [vmem:[%s3790_s4 + $0x238] sm:$0xff] }
 0x30d   : > { %v1390_v30 = vpop.f32.mrf.mxu1 }
 0x310   : > { %2667 = vmatmul.msk.f32.vlgmr.msrb.gmra.mxu2 %vm1088_vm4, %v2659_v27  ;;  %v1575_v20 = vpop.f32.mrf.mxu3 }
 0x311   : > { %v1293_v28 = vpop.f32.mrf.mxu0 }
 0x312   : > { %v1309_v2 = vadd.f32 %v1293_v28, %v3478_v14 }
 0x313   : > { %v1148_v23 = vpop.f32.mrf.mxu2 }
 0x314   : > { %v1214_v31 = vadd.f32 %v1213_v19, %v1148_v23  ;;  %v1403_v4 = vadd.f32 %v3484_v17, %v1309_v2 }
 0x315   : > { %v1393_v38 = vpop.f32.mrf.mxu1 }
 0x318   : > { %2668 = vmatmul.msk.f32.gmra.mxu2 %vm1088_vm4, %v2660_v32  ;;  %v1578_v27 = vpop.f32.mrf.mxu3 }
 0x319   : > { %v1296_v33 = vpop.f32.mrf.mxu0 }
 0x31a   : > { %v1310_v9 = vadd.f32 %v1296_v33, %v1211_v22 }
 0x31b   : > { %v1151_v34 = vpop.f32.mrf.mxu2 }
 0x31c   : > { %v1217_v35 = vadd.f32 %v1216_v24, %v1151_v34  ;;  %v1404_v10 = vadd.f32 %v1390_v30, %v1310_v9 }
 0x31d   : > { %v1396_v46 = vpop.f32.mrf.mxu1 }
 0x320   : > { %2669 = vmatmul.msk.f32.gmra.mxu2 %vm1088_vm4, %v2661_v37  ;;  %v1581_v29 = vpop.f32.mrf.mxu3 }
 0x321   : > { %v1299_v40 = vpop.f32.mrf.mxu0 }
 0x322   : > { %v1311_v13 = vadd.f32 %v1299_v40, %v1214_v31 }
 0x323   : > { %v1469_v41 = vpop.f32.mrf.mxu2 }
 0x324   : > { %v1493_v42 = vadd.f32 %v1469_v41, %v1399_v60  ;;  %v2664_v60 = vld [vmem:[%s3790_s4 + $0x228] sm:$0xff]  ;;  %v3552_v41 = vpop.permute.xlu0 %2072 }
 0x325   : > { %v1751_v55 = vpop.f32.mrf.mxu1 }
 0x326   : > { %v1587_v44 = vadd.f32 %v1563_v36, %v1493_v42 }
 0x328   : > { %2670 = vmatmul.msk.f32.gmra.mxu2 %vm1088_vm4, %v2662_v43  ;;  %v3546_v24 = vpop.f32.mrf.mxu3 }
 0x329   : > { %v1302_v48 = vpop.f32.mrf.mxu0 }
 0x32a   : > { %v1312_v16 = vadd.f32 %v1302_v48, %v1217_v35 }
 0x32b   : > { %v1472_v49 = vpop.f32.mrf.mxu2 }
 0x32c   : > { %v1494_v50 = vadd.f32 %v1472_v49, %v1400_v5  ;;  %v1406_v18 = vadd.f32 %v1396_v46, %v1312_v16  ;;  %v2002_v46 = vpop.permute.xlu0 %2001 }
 0x32d   : > { %v1754_v26 = vpop.f32.mrf.mxu1 }
 0x32e   : > { %v3525_v52 = vadd.f32 %v1566_v45, %v1494_v50  ;;  %v3558_v45 = vpop.permute.xlu1 %2016 }
 0x330   : > { %2671 = vmatmul.msk.f32.gmra.mxu2 %vm1088_vm4, %v2663_v51  ;;  %v1939_v32 = vpop.f32.mrf.mxu3 }
 0x331   : > { %v1657_v54 = vpop.f32.mrf.mxu0 }
 0x332   : > { %v1681_v56 = vadd.f32 %v1657_v54, %v1587_v44 }
 0x333   : > { %v1475_v57 = vpop.f32.mrf.mxu2 }
 0x334   : > { %v1495_v58 = vadd.f32 %v1475_v57, %v1401_v6  ;;  %v1775_v59 = vadd.f32 %v1751_v55, %v1681_v56  ;;  %v1405_v6 = vadd.f32 %v1393_v38, %v1311_v13  ;;  %v2058_v54 = vpop.permute.xlu0 %2057  ;;  %v2012_v56 = vpop.permute.xlu2 %2011 }
 0x335   : > { %v1757_v37 = vpop.f32.mrf.mxu1 }
 0x336   : > { %v1589_v61 = vadd.f32 %v1569_v53, %v1495_v58  ;;  %v2007_v53 = vpop.permute.xlu1 %2006 }
 0x338   : > { %2672 = vmatmul.msk.f32.gmra.mxu2 %vm1088_vm4, %v2664_v60  ;;  %v1942_v34 = vpop.f32.mrf.mxu3 }
 0x339   : > { %v1660_v55 = vpop.f32.mrf.mxu0 }
 0x33a   : > { %v1682_v58 = vadd.f32 %v1660_v55, %v3525_v52 }
 0x33b   : > { %v1478_v62 = vpop.f32.mrf.mxu2 }
 0x33c   : > { %v1496_v0 = vadd.f32 %v1478_v62, %v1402_v25 }
 0x33d   : > { %v3554_v42 = vpop.f32.mrf.mxu1 }
 0x33e   : > { %v1590_v3 = vadd.f32 %v1572_v63, %v1496_v0 }
 0x340   : > { %2673 = vmatmul.msk.f32.gmra.mxu2 %vm1088_vm4, %v2665_v1  ;;  %v1945_v39 = vpop.f32.mrf.mxu3  ;;  %v1776_v1 = vadd.f32 %v1754_v26, %v1682_v58 }
 0x343   : > { %v1481_v5 = vpop.f32.mrf.mxu2 }
 0x344   : > { %v1497_v7 = vadd.f32 %v1481_v5, %v1403_v4  ;;  %v2063_v4 = vpop.permute.xlu1 %2062 }
 0x345   : > { %v1763_v47 = vpop.f32.mrf.mxu1 }
 0x346   : > { %v1591_v49 = vadd.f32 %v1575_v20, %v1497_v7  ;;  %v1987_v7 = vpop.permute.xlu0 %1986 }
 0x348   : > { %2674 = vmatmul.msk.f32.gmra.mxu2 %vm1088_vm4, %v2666_v8  ;;  %v3556_v44 = vpop.f32.mrf.mxu3 }
 0x34b   : > { %v1484_v11 = vpop.f32.mrf.mxu2 }
 0x34c   : > { %v1498_v12 = vadd.f32 %v1484_v11, %v1404_v10  ;;  %v2068_v10 = vpop.permute.xlu2 %2067  ;;  %v1992_v26 = vpop.permute.xlu1 %1991 }
 0x350   : > { %v1951_v50 = vpop.f32.mrf.mxu3 }
 0x353   : > { %v1487_v14 = vpop.f32.mrf.mxu2 }
 0x354   : > { %v1499_v15 = vadd.f32 %v1487_v14, %v1405_v6 }
 0x356   : > { %v1593_v13 = vadd.f32 %v1581_v29, %v1499_v15  ;;  %v2043_v15 = vpop.permute.xlu0 %2042 }
 0x358   : > { %v1954_v2 = vpop.f32.mrf.mxu3 }
 0x35b   : > { %v1490_v19 = vpop.f32.mrf.mxu2 }
 0x35c   : > { %v3542_v17 = vadd.f32 %v1490_v19, %v1406_v18 }
 0x35e   : > { %v1594_v29 = vadd.f32 %v3546_v24, %v3542_v17 }
 0x363   : > { %v1663_v21 = vpop.f32.mrf.mxu2 }
 0x364   : > { %v1683_v25 = vadd.f32 %v1663_v21, %v1589_v61  ;;  %v1592_v61 = vadd.f32 %v1578_v27, %v1498_v12 }
 0x366   : > { %v1777_v20 = vadd.f32 %v1757_v37, %v1683_v25 }
 0x36b   : > { %v1666_v28 = vpop.f32.mrf.mxu2 }
 0x36c   : > { %v3544_v22 = vadd.f32 %v1666_v28, %v1590_v3 }
 0x370   : > { %v1957_v28 = vpop.f32.mrf.mxu3 }
 0x373   : > { %v1669_v23 = vpop.f32.mrf.mxu2 }
 0x374   : > { %v1685_v51 = vadd.f32 %v1669_v23, %v1591_v49 }
 0x376   : > { %v1779_v57 = vadd.f32 %v1763_v47, %v1685_v51 }
 0x37b   : > { %v1672_v30 = vpop.f32.mrf.mxu2 }
 0x37c   : > { %v1686_v63 = vadd.f32 %v1672_v30, %v1592_v61 }
 0x383   : > { %v1675_v31 = vpop.f32.mrf.mxu2 }
 0x384   : > { %v1687_v12 = vadd.f32 %v1675_v31, %v1593_v13  ;;  %v1997_v31 = vpop.permute.xlu2 %1996 }
 0x38b   : > { %v3548_v33 = vpop.f32.mrf.mxu2 }
 0x393   : > { %v1845_v35 = vpop.f32.mrf.mxu2 }
 0x394   : > { %v1869_v36 = vadd.f32 %v1845_v35, %v1775_v59  ;;  %v1766_v59 = vpop.f32.mrf.mxu1 }
 0x395   : > { %v1780_v8 = vadd.f32 %v1766_v59, %v1686_v63 }
 0x396   : > { %v3550_v38 = vadd.f32 %v1939_v32, %v1869_v36 }
 0x39b   : > { %v1848_v40 = vpop.f32.mrf.mxu2 }
 0x39c   : > { %v1870_v5 = vadd.f32 %v1848_v40, %v1776_v1  ;;  %v1769_v52 = vpop.f32.mrf.mxu1 }
 0x39d   : > { %v1781_v23 = vadd.f32 %v1769_v52, %v1687_v12 }
 0x39e   : > { %v1964_v16 = vadd.f32 %v1942_v34, %v1870_v5 }
 0x3a0   : > { %v2020_v27 = vmul.f32 %v1987_v7, %v1964_v16 }
 0x3a2   : > { %v2076_v40 = vadd.f32 %v2043_v15, %v2020_v27  ;;  %v2127_v15 = vld [vmem:[%s3793_s7 + $0x18] sm:$0xff] }
 0x3a3   : > { %v1851_v43 = vpop.f32.mrf.mxu2 }
 0x3a4   : > { %v1871_v30 = vadd.f32 %v1851_v43, %v1777_v20  ;;  %v1772_v49 = vpop.f32.mrf.mxu1  ;;  %v1778_v43 = vadd.f32 %v3554_v42, %v3544_v22  ;;  %v2084_v51 = vmax.f32 %v2076_v40, 0.0  ;;  %v2053_v22 = vpop.permute.xlu2 %2052  ;;  %v2132_v40 = vld [vmem:[%s3793_s7 + $0x40] sm:$0xff] }
 0x3a6   : > { %v1965_v47 = vadd.f32 %v1945_v39, %v1871_v30  ;;  %v2095_v39 = vsel %vm2091_vm5, %v2084_v51, 0.0 }
 0x3ab   : > { %v1854_v48 = vpop.f32.mrf.mxu2 }
 0x3ac   : > { %v1872_v17 = vadd.f32 %v1854_v48, %v1778_v43  ;;  %v2138_v43 = vld [vmem:[%s3793_s7 + $0x70] sm:$0xff] }
 0x3b3   : > { %v1857_v60 = vpop.f32.mrf.mxu2 }
 0x3b4   : > { %v1873_v62 = vadd.f32 %v1857_v60, %v1779_v57  ;;  %v1960_v57 = vpop.f32.mrf.mxu3  ;;  %v1966_v60 = vadd.f32 %v3556_v44, %v1872_v17  ;;  %v1982_v44 = vpop.permute.xlu2 %1981 }
 0x3b5   : > { %v2019_v5 = vmul.f32 %v1982_v44, %v3550_v38  ;;  %v2151_v44 = vld [vmem:[%s3794_s8 + $0x58] sm:$0xff] }
 0x3b6   : > { %v1967_v0 = vadd.f32 %v1951_v50, %v1873_v62  ;;  %v2022_v48 = vmul.f32 %v1997_v31, %v1966_v60  ;;  %v2131_v31 = vld [vmem:[%s3793_s7 + $0x38] sm:$0xff] }
 0x3b8   : > { %v2023_v3 = vmul.f32 %v2002_v46, %v1967_v0  ;;  %v1688_v46 = vadd.f32 %v3548_v33, %v1594_v29  ;;  %v2048_v33 = vpop.permute.xlu1 %2047  ;;  %v2128_v29 = vld [vmem:[%s3793_s7 + $0x20] sm:$0xff] }
 0x3ba   : > { %v2079_v9 = vadd.f32 %v2058_v54, %v2023_v3  ;;  %v2021_v54 = vmul.f32 %v1992_v26, %v1965_v47  ;;  %v2125_v26 = vld [vmem:[%s3793_s7 + $0x8] sm:$0xff]  ;;  %v2134_v47 = vld [vmem:[%s3793_s7 + $0x50] sm:$0xff] }
 0x3bb   : > { %v1860_v11 = vpop.f32.mrf.mxu2 }
 0x3bc   : > { %v1874_v6 = vadd.f32 %v1860_v11, %v1780_v8  ;;  %v2087_v14 = vmax.f32 %v2079_v9, 0.0  ;;  %v2077_v63 = vadd.f32 %v2048_v33, %v2021_v54 }
 0x3be   : > { %v1968_v18 = vadd.f32 %v1954_v2, %v1874_v6  ;;  %v2104_v19 = vsel %vm2091_vm5, %v2087_v14, 0.0 }
 0x3bf   : > { %2105 = vadd.xlane.f32.xlu2 %v2104_v19 }
 0x3c0   : > { %v2024_v21 = vmul.f32 %v2007_v53, %v1968_v18  ;;  %v1782_v53 = vadd.f32 %v1772_v49, %v1688_v46  ;;  %v2038_v8 = vpop.permute.xlu1 %2037  ;;  %v2133_v46 = vld [vmem:[%s3793_s7 + $0x48] sm:$0xff] }
 0x3c1   : > { %v2137_v49 = vld [vmem:[%s3793_s7 + $0x68] sm:$0xff] }
 0x3c2   : > { %v2080_v32 = vadd.f32 %v2063_v4, %v2024_v21  ;;  %v2078_v4 = vadd.f32 %v2053_v22, %v2022_v48  ;;  %v2154_v22 = vld [vmem:[%s3794_s8 + $0x70] sm:$0xff]  ;;  %v2153_v48 = vld [vmem:[%s3794_s8 + $0x68] sm:$0xff] }
 0x3c3   : > { %v1863_v35 = vpop.f32.mrf.mxu2 }
 0x3c4   : > { %v1875_v34 = vadd.f32 %v1863_v35, %v1781_v23  ;;  %v2088_v36 = vmax.f32 %v2080_v32, 0.0  ;;  %v2086_v7 = vmax.f32 %v2078_v4, 0.0  ;;  %v2124_v32 = vld [vmem:[%s3793_s7] sm:$0xff]  ;;  %v2126_v35 = vld [vmem:[%s3793_s7 + $0x10] sm:$0xff] }
 0x3c6   : > { %v1969_v25 = vadd.f32 %v1957_v28, %v1875_v34  ;;  %v2107_v37 = vsel %vm2091_vm5, %v2088_v36, 0.0  ;;  %v2101_v9 = vsel %vm2091_vm5, %v2086_v7, 0.0  ;;  %v2129_v34 = vld [vmem:[%s3793_s7 + $0x28] sm:$0xff]  ;;  %v2130_v36 = vld [vmem:[%s3793_s7 + $0x30] sm:$0xff] }
 0x3c7   : > { %2108 = vadd.xlane.f32.xlu1 %v2107_v37  ;;  %v2136_v37 = vld [vmem:[%s3793_s7 + $0x60] sm:$0xff] }
 0x3c8   : > { %v2025_v50 = vmul.f32 %v2012_v56, %v1969_v25  ;;  %v2085_v56 = vmax.f32 %v2077_v63, 0.0  ;;  %v2135_v25 = vld [vmem:[%s3793_s7 + $0x58] sm:$0xff] }
 0x3ca   : > { %v2081_v24 = vadd.f32 %v2068_v10, %v2025_v50  ;;  %v2098_v2 = vsel %vm2091_vm5, %v2085_v56, 0.0  ;;  %v2139_v50 = vld [vmem:[%s3793_s7 + $0x78] sm:$0xff] }
 0x3cb   : > { %v1866_v55 = vpop.f32.mrf.mxu2 }
 0x3cc   : > { %v1876_v58 = vadd.f32 %v1866_v55, %v1782_v53  ;;  %v2089_v59 = vmax.f32 %v2081_v24, 0.0 }
 0x3ce   : > { %v1970_v61 = vadd.f32 %v1960_v57, %v1876_v58  ;;  %v2110_v62 = vsel %vm2091_vm5, %v2089_v59, 0.0 }
 0x3cf   : > { %2096 = vadd.xlane.f32.xlu1 %v2095_v39  ;;  %2111 = vadd.xlane.f32.xlu0 %v2110_v62 }
 0x3d0   : > { %v2026_v42 = vmul.f32 %v3558_v45, %v1970_v61  ;;  %v2075_v45 = vadd.f32 %v2038_v8, %v2019_v5  ;;  %v2150_v8 = vld [vmem:[%s3794_s8 + $0x50] sm:$0xff] }
 0x3d2   : > { %v2082_v0 = vadd.f32 %v3552_v41, %v2026_v42  ;;  %v2083_v10 = vmax.f32 %v2075_v45, 0.0  ;;  %v2155_v42 = vld [vmem:[%s3794_s8 + $0x78] sm:$0xff] }
 0x3d4   : > { %v2090_v1 = vmax.f32 %v2082_v0, 0.0  ;;  %v2092_v41 = vsel %vm2091_vm5, %v2083_v10, 0.0  ;;  %v2149_v10 = vld [vmem:[%s3794_s8 + $0x48] sm:$0xff] }
 0x3d6   : > { %v2113_v3 = vsel %vm2091_vm5, %v2090_v1, 0.0 }
 0x3d7   : > { %2099 = vadd.xlane.f32.xlu0 %v2098_v2  ;;  %2114 = vadd.xlane.f32.xlu2 %v2113_v3  ;;  %v2152_v2 = vld [vmem:[%s3794_s8 + $0x60] sm:$0xff] }
 0x3df   : > { %2102 = vadd.xlane.f32.xlu2 %v2101_v9 }
 0x3e7   : > { %2093 = vadd.xlane.f32.xlu2 %v2092_v41 }
 0x432   : > { %v2106_v11 = vpop.xlane.xlu2 %2105 }
 0x433   : > { %v2120_v38 = vmul.f32 0.055555556, %v2106_v11 }
 0x43a   : > { %v2109_v6 = vpop.xlane.xlu1 %2108 }
 0x43b   : > { %v2121_v12 = vmul.f32 0.055555556, %v2109_v6 }
 0x442   : > { %v2112_v13 = vpop.xlane.xlu0 %2111  ;;  %v2097_v21 = vpop.xlane.xlu1 %2096 }
 0x443   : > { %v2122_v16 = vmul.f32 0.055555556, %v2112_v13  ;;  %v2117_v28 = vmul.f32 0.055555556, %v2097_v21  ;;  %v2148_v13 = vld [vmem:[%s3794_s8 + $0x40] sm:$0xff] }
 0x44a   : > { %v2115_v14 = vpop.xlane.xlu2 %2114  ;;  %v2100_v18 = vpop.xlane.xlu0 %2099 }
 0x44b   : > { %v2123_v52 = vmul.f32 0.055555556, %v2115_v14  ;;  %v2118_v27 = vmul.f32 0.055555556, %v2100_v18 }
 0x44d   : > { %2213 = vmatpush.msrb.mxu0 %v2123_v52  ;;  %v2147_v52 = vld [vmem:[%s3794_s8 + $0x38] sm:$0xff] }
 0x44f   : > { %2214 = vmatpush.msrb.mxu0 %v2122_v16 }
 0x451   : > { %2215 = vmatpush.msrb.mxu0 %v2121_v12 }
 0x452   : > { %v2103_v19 = vpop.xlane.xlu2 %2102 }
 0x453   : > { %v2119_v20 = vmul.f32 0.055555556, %v2103_v19  ;;  %2216 = vmatpush.msrb.mxu0 %v2120_v38  ;;  %v2146_v38 = vld [vmem:[%s3794_s8 + $0x30] sm:$0xff] }
 0x455   : > { %2217 = vmatpush.msrb.mxu0 %v2119_v20  ;;  %v2145_v20 = vld [vmem:[%s3794_s8 + $0x28] sm:$0xff] }
 0x457   : > { %2218 = vmatpush.msrb.mxu0 %v2118_v27 }
 0x459   : > { %2219 = vmatpush.msrb.mxu0 %v2117_v28  ;;  %v2144_v28 = vld [vmem:[%s3794_s8 + $0x20] sm:$0xff] }
 0x45a   : > { %v2094_v23 = vpop.xlane.xlu2 %2093 }
 0x45b   : > { %v2116_v30 = vmul.f32 0.055555556, %v2094_v23 }
 0x45d   : > { %2220 = vmatpush.msrb.mxu0 %v2116_v30 }
 0x45e   : > { %2691 = vmatmul.msk.f32.vlgmr.msrb.gmra.mxu0 %vm2156_vm6, %v2124_v32  ;;  %v2143_v32 = vld [vmem:[%s3794_s8 + $0x18] sm:$0xff] }
 0x466   : > { %2692 = vmatmul.msk.f32.gmra.mxu0 %vm2156_vm6, %v2125_v26 }
 0x46e   : > { %2693 = vmatmul.msk.f32.gmra.mxu0 %vm2156_vm6, %v2126_v35 }
 0x476   : > { %2694 = vmatmul.msk.f32.gmra.mxu0 %vm2156_vm6, %v2127_v15  ;;  %v2142_v15 = vld [vmem:[%s3794_s8 + $0x10] sm:$0xff] }
 0x47e   : > { %2695 = vmatmul.msk.f32.gmra.mxu0 %vm2156_vm6, %v2128_v29 }
 0x486   : > { %2696 = vmatmul.msk.f32.gmra.mxu0 %vm2156_vm6, %v2129_v34 }
 0x48e   : > { %2697 = vmatmul.msk.f32.gmra.mxu0 %vm2156_vm6, %v2130_v36  ;;  %v2141_v36 = vld [vmem:[%s3794_s8 + $0x8] sm:$0xff] }
 0x496   : > { %2698 = vmatmul.msk.f32.gmra.mxu0 %vm2156_vm6, %v2131_v31 }
 0x49e   : > { %2699 = vmatmul.msk.f32.gmra.mxu0 %vm2156_vm6, %v2132_v40 }
 0x4a6   : > { %2700 = vmatmul.msk.f32.gmra.mxu0 %vm2156_vm6, %v2133_v46  ;;  %v2140_v46 = vld [vmem:[%s3794_s8] sm:$0xff] }
 0x4ae   : > { %2701 = vmatmul.msk.f32.gmra.mxu0 %vm2156_vm6, %v2134_v47 }
 0x4b6   : > { %2702 = vmatmul.msk.f32.gmra.mxu0 %vm2156_vm6, %v2135_v25 }
 0x4be   : > { %2703 = vmatmul.msk.f32.gmra.mxu0 %vm2156_vm6, %v2136_v37 }
 0x4c6   : > { %2704 = vmatmul.msk.f32.gmra.mxu0 %vm2156_vm6, %v2137_v49 }
 0x4ce   : > { %2705 = vmatmul.msk.f32.gmra.mxu0 %vm2156_vm6, %v2138_v43 }
 0x4d6   : > { %2706 = vmatmul.msk.f32.gmra.mxu0 %vm2156_vm6, %v2139_v50 }
 0x4db   : > { %v3642_v51 = vpop.f32.mrf.mxu0 }
 0x4dc   : > { %v2223_v37 = vadd.f32 %v3642_v51, %v2140_v46  ;;  %v2288_v51 = vld [vmem:[%s3795_s9 + $0x10] sm:$0xff] }
 0x4de   : > { %v2270_v50 = vmax.f32 %v2223_v37, 0.0 }
 0x4e3   : > { %v3644_v53 = vpop.f32.mrf.mxu0 }
 0x4e4   : > { %v2226_v47 = vadd.f32 %v3644_v53, %v2141_v36  ;;  %v2287_v53 = vld [vmem:[%s3795_s9 + $0x8] sm:$0xff] }
 0x4e6   : > { %v2271_v43 = vmax.f32 %v2226_v47, 0.0 }
 0x4eb   : > { %v3646_v54 = vpop.f32.mrf.mxu0 }
 0x4ec   : > { %v2229_v31 = vadd.f32 %v3646_v54, %v2142_v15  ;;  %v2286_v54 = vld [vmem:[%s3795_s9] sm:$0xff]  ;;  %v2357_v15 = vld [vmem:[%s3797_s11 + $0x30] sm:$0xff] }
 0x4ee   : > { %v2272_v49 = vmax.f32 %v2229_v31, 0.0  ;;  %v2301_v31 = vld [vmem:[%s3796_s10 + $0x38] sm:$0xff] }
 0x4f3   : > { %v2231_v17 = vpop.f32.mrf.mxu0 }
 0x4f4   : > { %v2232_v29 = vadd.f32 %v2231_v17, %v2143_v32  ;;  %v2289_v17 = vld [vmem:[%s3795_s9 + $0x18] sm:$0xff] }
 0x4f6   : > { %v2273_v25 = vmax.f32 %v2232_v29, 0.0 }
 0x4fb   : > { %v2234_v24 = vpop.f32.mrf.mxu0 }
 0x4fc   : > { %v2235_v26 = vadd.f32 %v2234_v24, %v2144_v28  ;;  %v2290_v24 = vld [vmem:[%s3795_s9 + $0x20] sm:$0xff]  ;;  %v2356_v28 = vld [vmem:[%s3797_s11 + $0x28] sm:$0xff] }
 0x4fe   : > { %v2274_v40 = vmax.f32 %v2235_v26, 0.0 }
 0x503   : > { %v2237_v55 = vpop.f32.mrf.mxu0 }
 0x504   : > { %v2238_v23 = vadd.f32 %v2237_v55, %v2145_v20  ;;  %v2291_v55 = vld [vmem:[%s3795_s9 + $0x28] sm:$0xff] }
 0x506   : > { %v2275_v34 = vmax.f32 %v2238_v23, 0.0 }
 0x50b   : > { %v2240_v57 = vpop.f32.mrf.mxu0 }
 0x50c   : > { %v2241_v21 = vadd.f32 %v2240_v57, %v2146_v38  ;;  %v2292_v57 = vld [vmem:[%s3795_s9 + $0x30] sm:$0xff]  ;;  %v2355_v38 = vld [vmem:[%s3797_s11 + $0x20] sm:$0xff] }
 0x50e   : > { %v2276_v35 = vmax.f32 %v2241_v21, 0.0 }
 0x513   : > { %v2243_v58 = vpop.f32.mrf.mxu0 }
 0x514   : > { %v2244_v18 = vadd.f32 %v2243_v58, %v2147_v52  ;;  %v2293_v58 = vld [vmem:[%s3795_s9 + $0x38] sm:$0xff] }
 0x516   : > { %v2277_v30 = vmax.f32 %v2244_v18, 0.0 }
 0x51b   : > { %v2246_v59 = vpop.f32.mrf.mxu0 }
 0x51c   : > { %v2247_v16 = vadd.f32 %v2246_v59, %v2148_v13 }
 0x51e   : > { %v2278_v27 = vmax.f32 %v2247_v16, 0.0 }
 0x523   : > { %v2249_v33 = vpop.f32.mrf.mxu0 }
 0x524   : > { %v2250_v6 = vadd.f32 %v2249_v33, %v2149_v10  ;;  %v2353_v10 = vld [vmem:[%s3797_s11 + $0x10] sm:$0xff] }
 0x526   : > { %v2279_v19 = vmax.f32 %v2250_v6, 0.0  ;;  %v2354_v6 = vld [vmem:[%s3797_s11 + $0x18] sm:$0xff] }
 0x52b   : > { %v2252_v39 = vpop.f32.mrf.mxu0 }
 0x52c   : > { %v2253_v41 = vadd.f32 %v2252_v39, %v2150_v8 }
 0x52e   : > { %v2280_v12 = vmax.f32 %v2253_v41, 0.0 }
 0x533   : > { %v2255_v60 = vpop.f32.mrf.mxu0 }
 0x534   : > { %v2256_v9 = vadd.f32 %v2255_v60, %v2151_v44  ;;  %v2352_v44 = vld [vmem:[%s3797_s11 + $0x8] sm:$0xff] }
 0x536   : > { %v2281_v14 = vmax.f32 %v2256_v9, 0.0 }
 0x53b   : > { %v2258_v61 = vpop.f32.mrf.mxu0 }
 0x53c   : > { %v2259_v5 = vadd.f32 %v2258_v61, %v2152_v2 }
 0x53e   : > { %v2282_v11 = vmax.f32 %v2259_v5, 0.0  ;;  %v2299_v5 = vld [vmem:[%s3796_s10 + $0x28] sm:$0xff] }
 0x543   : > { %v2261_v62 = vpop.f32.mrf.mxu0 }
 0x544   : > { %v2262_v3 = vadd.f32 %v2261_v62, %v2153_v48  ;;  %v2295_v62 = vld [vmem:[%s3796_s10 + $0x8] sm:$0xff]  ;;  %v2297_v48 = vld [vmem:[%s3796_s10 + $0x18] sm:$0xff] }
 0x546   : > { %v2283_v45 = vmax.f32 %v2262_v3, 0.0 }
 0x54b   : > { %v2264_v63 = vpop.f32.mrf.mxu0 }
 0x54c   : > { %v2265_v0 = vadd.f32 %v2264_v63, %v2154_v22  ;;  %v2294_v63 = vld [vmem:[%s3796_s10] sm:$0xff]  ;;  %v2296_v22 = vld [vmem:[%s3796_s10 + $0x10] sm:$0xff] }
 0x54e   : > { %v2284_v7 = vmax.f32 %v2265_v0, 0.0 }
 0x553   : > { %v2267_v56 = vpop.f32.mrf.mxu0 }
 0x554   : > { %v2268_v1 = vadd.f32 %v2267_v56, %v2155_v42 }
 0x556   : > { %v2285_v4 = vmax.f32 %v2268_v1, 0.0  ;;  %v2298_v1 = vld [vmem:[%s3796_s10 + $0x20] sm:$0xff] }
 0x558   : > { %2302 = vmatpush.msrb.mxu1 %v2285_v4 }
 0x55a   : > { %2303 = vmatpush.msrb.mxu1 %v2284_v7 }
 0x55c   : > { %2304 = vmatpush.msrb.mxu1 %v2283_v45  ;;  %v2351_v45 = vld [vmem:[%s3797_s11] sm:$0xff] }
 0x55e   : > { %2305 = vmatpush.msrb.mxu1 %v2282_v11 }
 0x560   : > { %2306 = vmatpush.msrb.mxu1 %v2281_v14  ;;  %v2300_v14 = vld [vmem:[%s3796_s10 + $0x30] sm:$0xff] }
 0x562   : > { %2307 = vmatpush.msrb.mxu1 %v2280_v12 }
 0x564   : > { %2308 = vmatpush.msrb.mxu1 %v2279_v19 }
 0x566   : > { %2309 = vmatpush.msrb.mxu1 %v2278_v27 }
 0x568   : > { %2310 = vmatpush.msrb.mxu1 %v2277_v30 }
 0x56a   : > { %2311 = vmatpush.msrb.mxu1 %v2276_v35 }
 0x56c   : > { %2312 = vmatpush.msrb.mxu1 %v2275_v34 }
 0x56e   : > { %2313 = vmatpush.msrb.mxu1 %v2274_v40 }
 0x570   : > { %2314 = vmatpush.msrb.mxu1 %v2273_v25 }
 0x572   : > { %2315 = vmatpush.msrb.mxu1 %v2272_v49 }
 0x574   : > { %2316 = vmatpush.msrb.mxu1 %v2271_v43 }
 0x576   : > { %2317 = vmatpush.msrb.mxu1 %v2270_v50  ;;  %v2358_v50 = vld [vmem:[%s3797_s11 + $0x38] sm:$0xff] }
 0x577   : > { %2318 = vmatmul.f32.vlgmr.msrb.gmra.mxu1 %v2286_v54 }
 0x57f   : > { %2321 = vmatmul.f32.gmra.mxu1 %v2287_v53 }
 0x587   : > { %2324 = vmatmul.f32.gmra.mxu1 %v2288_v51 }
 0x58f   : > { %2327 = vmatmul.f32.gmra.mxu1 %v2289_v17 }
 0x597   : > { %2330 = vmatmul.f32.gmra.mxu1 %v2290_v24 }
 0x59f   : > { %2333 = vmatmul.f32.gmra.mxu1 %v2291_v55 }
 0x5a7   : > { %2336 = vmatmul.f32.gmra.mxu1 %v2292_v57 }
 0x5af   : > { %2339 = vmatmul.f32.gmra.mxu1 %v2293_v58 }
 0x5f4   : > { %v2319_v59 = vpop.f32.mrf.mxu1 }
 0x5f5   : > { %v2320_v56 = vadd.f32 %v2319_v59, %v2294_v63 }
 0x5f7   : > { %v2343_v7 = vmax.f32 %v2320_v56, 0.0 }
 0x5f9   : > { %v2359_v52 = vmul.f32 %v2351_v45, %v2343_v7 }
 0x5fb   : > { %v2367_v23 = vsel %vm1045_vm2, %v2359_v52, 0.0 }
 0x5fc   : > { %v2322_v33 = vpop.f32.mrf.mxu1 }
 0x5fd   : > { %v2323_v42 = vadd.f32 %v2322_v33, %v2295_v62 }
 0x5ff   : > { %v2344_v3 = vmax.f32 %v2323_v42, 0.0 }
 0x601   : > { %v2360_v41 = vmul.f32 %v2352_v44, %v2344_v3 }
 0x603   : > { %v2368_v19 = vsel %vm1045_vm2, %v2360_v41, 0.0 }
 0x604   : > { %v2325_v39 = vpop.f32.mrf.mxu1  ;;  %v2369_v35 = vadd.f32 %v2368_v19, %v2367_v23 }
 0x605   : > { %v2326_v0 = vadd.f32 %v2325_v39, %v2296_v22 }
 0x607   : > { %v2345_v8 = vmax.f32 %v2326_v0, 0.0 }
 0x609   : > { %v2361_v16 = vmul.f32 %v2353_v10, %v2345_v8 }
 0x60b   : > { %v2370_v30 = vsel %vm1045_vm2, %v2361_v16, 0.0 }
 0x60c   : > { %v2328_v60 = vpop.f32.mrf.mxu1  ;;  %v2371_v36 = vadd.f32 %v2370_v30, %v2369_v35 }
 0x60d   : > { %v2329_v4 = vadd.f32 %v2328_v60, %v2297_v48 }
 0x60f   : > { %v2346_v11 = vmax.f32 %v2329_v4, 0.0 }
 0x611   : > { %v2362_v20 = vmul.f32 %v2354_v6, %v2346_v11 }
 0x613   : > { %v2372_v29 = vsel %vm1045_vm2, %v2362_v20, 0.0 }
 0x614   : > { %v2331_v61 = vpop.f32.mrf.mxu1  ;;  %v2373_v47 = vadd.f32 %v2372_v29, %v2371_v36 }
 0x615   : > { %v2332_v9 = vadd.f32 %v2331_v61, %v2298_v1  ;;  %v2388_v61 = vld [vmem:[#allocation2] sm:$0x1] }
 0x617   : > { %v2347_v12 = vmax.f32 %v2332_v9, 0.0 }
 0x619   : > { %v2363_v32 = vmul.f32 %v2355_v38, %v2347_v12 }
 0x61b   : > { %v2374_v40 = vsel %vm1045_vm2, %v2363_v32, 0.0 }
 0x61c   : > { %v2334_v2 = vpop.f32.mrf.mxu1  ;;  %v2375_v43 = vadd.f32 %v2374_v40, %v2373_v47 }
 0x61d   : > { %v2335_v13 = vadd.f32 %v2334_v2, %v2299_v5 }
 0x61f   : > { %v2348_v21 = vmax.f32 %v2335_v13, 0.0 }
 0x621   : > { %v2364_v34 = vmul.f32 %v2356_v28, %v2348_v21 }
 0x623   : > { %v2376_v37 = vsel %vm1045_vm2, %v2364_v34, 0.0 }
 0x624   : > { %v2337_v18 = vpop.f32.mrf.mxu1  ;;  %v2377_v51 = vadd.f32 %v2376_v37, %v2375_v43 }
 0x625   : > { %v2338_v27 = vadd.f32 %v2337_v18, %v2300_v14 }
 0x627   : > { %v2349_v26 = vmax.f32 %v2338_v27, 0.0 }
 0x629   : > { %v2365_v46 = vmul.f32 %v2357_v15, %v2349_v26 }
 0x62b   : > { %v2378_v54 = vsel %vm1045_vm2, %v2365_v46, 0.0 }
 0x62c   : > { %v2340_v25 = vpop.f32.mrf.mxu1  ;;  %v2379_v24 = vadd.f32 %v2378_v54, %v2377_v51 }
 0x62d   : > { %v2341_v49 = vadd.f32 %v2340_v25, %v2301_v31 }
 0x62f   : > { %v2350_v53 = vmax.f32 %v2341_v49, 0.0 }
 0x631   : > { %v2366_v17 = vmul.f32 %v2358_v50, %v2350_v53 }
 0x633   : > { %v2380_v55 = vsel %vm1045_vm2, %v2366_v17, 0.0 }
 0x634   : > { %v2381_v57 = vadd.f32 %v2380_v55, %v2379_v24 }
 0x636   : > { %v2382_v58 = vrot.slane %v2381_v57, 4 }
 0x638   : > { %v2383_v59 = vadd.f32 %v2382_v58, %v2381_v57 }
 0x63a   : > { %v2384_v33 = vrot.slane %v2383_v59, 2 }
 0x63c   : > { %v2385_v39 = vadd.f32 %v2384_v33, %v2383_v59 }
 0x63e   : > { %v2386_v60 = vrot.slane %v2385_v39, 1 }
 0x640   : > { %v2387_v62 = vadd.f32 %v2386_v60, %v2385_v39 }
 0x642   : > { %v2389_v63 = vadd.f32 %v2388_v61, %v2387_v62 }
 0x644   : > { %2392 = vperm.xlu0 %2733, %v2389_v63  }
 0x6b6   : > { %v2393_v22 = vpop.permute.xlu0 %2392 }
 0x6b7   : > { %2395 = vst [vmem:[%s435_s14] sm:$0x1] %v2393_v22 }
 0x6b8 PF: > { %s25_s27 = sadd.s32 1, %s2832_s27  }
 0x6b9   : > { %p22_p4 = scmp.ge.s32.totalorder %s25_s27, 6  }
 0x6bb   :  { %24 = sbr.rel (!%p22_p4) target bundleno = 3 (0x3), region = 120 }

</bundles_post_ra>
